<compile_context>
chip_gen: v7x
topology: tpu7x:2x2x1
jax: 0.10.0
libtpu: 0.0.40
codegen_flags: <defaults>
</compile_context>

<pallas_src>
import functools

import jax
import jax.numpy as jnp
from jax.experimental import pallas as pl
from jax.experimental.pallas import tpu as pltpu


def _round_up(x, m):
    return ((x + m - 1) // m) * m


# ---------------------------------------------------------------------------
# Kernels
# ---------------------------------------------------------------------------
def _fused_kernel(a_sub_ref, a_glob_ref, x_ref, w1_ref, b1_ref, w2_ref, b2_ref,
                  gamma_ref, beta_ref, o_ref, *, n_valid, eps):
    """Whole forward in VMEM: GCN1 -> relu -> GCN2 -> relu -> BatchNorm."""
    # layer 1: relu((A_sub @ X) @ W1 + b1)
    ax = jnp.dot(a_sub_ref[...], x_ref[...], preferred_element_type=jnp.float32)
    h = jnp.dot(ax.astype(jnp.bfloat16), w1_ref[...],
                preferred_element_type=jnp.float32) + b1_ref[...]
    h = jnp.maximum(h, 0.0)

    # layer 2: relu((A_glob @ H) @ W2 + b2)
    ah = jnp.dot(a_glob_ref[...], h.astype(jnp.bfloat16),
                 preferred_element_type=jnp.float32)
    g = jnp.dot(ah.astype(jnp.bfloat16), w2_ref[...],
                preferred_element_type=jnp.float32) + b2_ref[...]
    g = jnp.maximum(g, 0.0)

    # BatchNorm (training-mode biased stats over the n_valid real rows)
    rows = jax.lax.broadcasted_iota(jnp.int32, g.shape, 0)
    gm = jnp.where(rows < n_valid, g, 0.0)
    inv_n = 1.0 / n_valid
    mean = jnp.sum(gm, axis=0, keepdims=True) * inv_n
    var = jnp.maximum(jnp.sum(gm * gm, axis=0, keepdims=True) * inv_n
                      - mean * mean, 0.0)
    scale = gamma_ref[...] * jax.lax.rsqrt(var + eps)
    shift = beta_ref[...] - mean * scale
    o_ref[...] = (g * scale + shift).astype(o_ref.dtype)


def _gcn_layer_kernel(a_ref, x_ref, w_ref, b_ref, h_ref):
    """One GCN layer on a row tile: relu((A_tile @ X) @ W + b)."""
    ax = jnp.dot(a_ref[...], x_ref[...], preferred_element_type=jnp.float32)
    h = jnp.dot(ax.astype(jnp.bfloat16), w_ref[...],
                preferred_element_type=jnp.float32) + b_ref[...]
    h_ref[...] = jnp.maximum(h, 0.0).astype(h_ref.dtype)


def _gcn_layer_stats_kernel(a_ref, h_ref, w_ref, b_ref, g_ref, part_ref, *,
                            tm, n_valid):
    """Second GCN layer + one-pass BatchNorm partials (sum, sum of squares)."""
    ah = jnp.dot(a_ref[...], h_ref[...], preferred_element_type=jnp.float32)
    g = jnp.dot(ah.astype(jnp.bfloat16), w_ref[...],
                preferred_element_type=jnp.float32) + b_ref[...]
    g = jnp.maximum(g, 0.0)
    g_ref[...] = g

    # Mask padded rows so the batch statistics only see the real n_valid nodes.
    row0 = pl.program_id(0) * tm
    rows = jax.lax.broadcasted_iota(jnp.int32, g.shape, 0) + row0
    gm = jnp.where(rows < n_valid, g, 0.0)
    s = jnp.sum(gm, axis=0, keepdims=True)
    ss = jnp.sum(gm * gm, axis=0, keepdims=True)
    part_ref[...] = jnp.concatenate([s, ss], axis=0).reshape(1, 2, g.shape[1])


def _bn_apply_kernel(g_ref, scale_ref, shift_ref, o_ref):
    """Row-tiled BatchNorm affine: out = g * scale + shift (lane-dense store)."""
    o_ref[...] = (g_ref[...] * scale_ref[...] + shift_ref[...]).astype(o_ref.dtype)


# ---------------------------------------------------------------------------
# Wrapper
# ---------------------------------------------------------------------------
def _compiler_params(sem):
    return pltpu.CompilerParams(
        dimension_semantics=sem,
        vmem_limit_bytes=48 * 1024 * 1024)


@functools.partial(jax.jit, static_argnames=("force_tiled",))
def spatial_extractor(x, a_sub, a_glob, w1, b1, w2, b2, gamma, beta,
                      force_tiled=False):
    eps = 1e-5
    n, d = x.shape
    dp = _round_up(d, 128)                   # lane-dense feature dim
    np_ = _round_up(n, 128)                  # padded node count

    bf16, f32 = jnp.bfloat16, jnp.float32

    # Pad to lane-dense shapes; MXU operands go in as bf16 (f32 accumulation).
    xp = jnp.zeros((np_, dp), f32).at[:n, :d].set(x).astype(bf16)
    a_sub_p = jnp.zeros((np_, np_), f32).at[:n, :n].set(a_sub).astype(bf16)
    a_glob_p = jnp.zeros((np_, np_), f32).at[:n, :n].set(a_glob).astype(bf16)
    w1p = jnp.zeros((dp, dp), f32).at[:d, :d].set(w1).astype(bf16)
    w2p = jnp.zeros((dp, dp), f32).at[:d, :d].set(w2).astype(bf16)
    b1p = jnp.zeros((1, dp), f32).at[:, :d].set(b1)
    b2p = jnp.zeros((1, dp), f32).at[:, :d].set(b2)
    gp = jnp.zeros((1, dp), f32).at[:, :d].set(gamma.reshape(1, -1))
    bp = jnp.zeros((1, dp), f32).at[:, :d].set(beta.reshape(1, -1))

    gcn_flops = 2 * np_ * np_ * dp + 2 * np_ * dp * dp

    # -------- fully fused path (whole problem VMEM-resident) ----------------
    # Static VMEM budget estimate: 2x-buffered inputs + f32 intermediates.
    fused_bytes = (2 * (2 * np_ * np_ * 2)      # adjacencies (bf16, dbl-buffered)
                   + 2 * (np_ * dp * 2)         # x bf16
                   + 4 * np_ * dp * 4           # ax, h, ah, g intermediates (f32)
                   + 2 * (2 * dp * dp * 2)      # weights bf16
                   + np_ * dp * 4)              # output f32
    use_fused = (not force_tiled) and fused_bytes <= 24 * 1024 * 1024

    full_adj = pl.BlockSpec((np_, np_), lambda i: (0, 0))
    feat_full = pl.BlockSpec((np_, dp), lambda i: (0, 0))
    w_full = pl.BlockSpec((dp, dp), lambda i: (0, 0))
    vec_full = pl.BlockSpec((1, dp), lambda i: (0, 0))

    if use_fused:
        out_p = pl.pallas_call(
            functools.partial(_fused_kernel, n_valid=n, eps=eps),
            out_shape=jax.ShapeDtypeStruct((np_, dp), f32),
            grid=(1,),
            in_specs=[full_adj, full_adj, feat_full, w_full, vec_full,
                      w_full, vec_full, vec_full, vec_full],
            out_specs=feat_full,
            compiler_params=_compiler_params(("arbitrary",)),
            cost_estimate=pl.CostEstimate(
                flops=2 * gcn_flops + 8 * np_ * dp,
                transcendentals=dp,
                bytes_accessed=(2 * 2 * np_ * np_ + 2 * np_ * dp
                                + 2 * 2 * dp * dp + 4 * np_ * dp)),
        )(a_sub_p, a_glob_p, xp, w1p, b1p, w2p, b2p, gp, bp)
        return out_p[:n, :d]

    # -------- row-tiled fallback (streams [tm, N] adjacency tiles) ----------
    # TODO(synk): for sparse graphs (E << N^2), replace the dense scatter +
    # dense A@H with scalar-prefetched edge/row offsets (PrefetchScalarGridSpec)
    # and row gathers of H inside the kernel.
    tm = 256 if np_ % 256 == 0 else 128      # 256-aligned rows for v6e/v7x MXU
    n_tiles = np_ // tm

    a_tile = pl.BlockSpec((tm, np_), lambda i: (i, 0))
    row_tile = pl.BlockSpec((tm, dp), lambda i: (i, 0))

    gcn_bytes = (2 * np_ * np_             # adjacency tile stream (bf16)
                 + 2 * np_ * dp * n_tiles  # resident feature matrix
                 + 2 * dp * dp + 4 * dp    # weights + bias
                 + 4 * np_ * dp)           # output

    # ---- layer 1: x_local = relu(GCN_local(x, A_sub)) ----------------------
    h = pl.pallas_call(
        _gcn_layer_kernel,
        out_shape=jax.ShapeDtypeStruct((np_, dp), bf16),
        grid=(n_tiles,),
        in_specs=[a_tile, feat_full, w_full, vec_full],
        out_specs=row_tile,
        compiler_params=_compiler_params(("parallel",)),
        cost_estimate=pl.CostEstimate(flops=gcn_flops, transcendentals=0,
                                      bytes_accessed=gcn_bytes),
    )(a_sub_p, xp, w1p, b1p)

    # ---- layer 2: x_lg = relu(GCN_glob(x_local, A_glob)) + BN partials -----
    g, parts = pl.pallas_call(
        functools.partial(_gcn_layer_stats_kernel, tm=tm, n_valid=n),
        out_shape=(jax.ShapeDtypeStruct((np_, dp), f32),
                   jax.ShapeDtypeStruct((n_tiles, 2, dp), f32)),
        grid=(n_tiles,),
        in_specs=[a_tile, feat_full, w_full, vec_full],
        out_specs=(row_tile, pl.BlockSpec((1, 2, dp), lambda i: (i, 0, 0))),
        compiler_params=_compiler_params(("parallel",)),
        cost_estimate=pl.CostEstimate(flops=gcn_flops + 4 * np_ * dp,
                                      transcendentals=0,
                                      bytes_accessed=gcn_bytes + 4 * np_ * dp),
    )(a_glob_p, h, w2p, b2p)

    # ---- BatchNorm finalize (tiny D-length reduction over tile partials) ---
    mean = parts[:, 0, :].sum(axis=0) / n
    var = jnp.maximum(parts[:, 1, :].sum(axis=0) / n - mean * mean, 0.0)
    scale = gp.reshape(-1) * jax.lax.rsqrt(var + eps)
    shift = bp.reshape(-1) - mean * scale

    # ---- BatchNorm affine, row-tiled, lane-dense stores ---------------------
    out = pl.pallas_call(
        _bn_apply_kernel,
        out_shape=jax.ShapeDtypeStruct((np_, dp), f32),
        grid=(n_tiles,),
        in_specs=[row_tile, vec_full, vec_full],
        out_specs=row_tile,
        compiler_params=_compiler_params(("parallel",)),
        cost_estimate=pl.CostEstimate(flops=2 * np_ * dp, transcendentals=0,
                                      bytes_accessed=12 * np_ * dp),
    )(g, scale.reshape(1, dp), shift.reshape(1, dp))

    return out[:n, :d]


# ---------------------------------------------------------------------------
# Graph glue (plain JAX): dense D^-1/2 (A + I) D^-1/2, A_hat[dst, src] (PyG GCNConv)
# ---------------------------------------------------------------------------
def gcn_norm_adj(edge_index, num_nodes):
    src = edge_index[0]
    dst = edge_index[1]
    loop = jnp.arange(num_nodes, dtype=edge_index.dtype)
    src = jnp.concatenate([src, loop])
    dst = jnp.concatenate([dst, loop])
    ones = jnp.ones(src.shape[0], jnp.float32)
    deg = jnp.zeros((num_nodes,), jnp.float32).at[dst].add(ones)
    dinv = jnp.where(deg > 0, 1.0 / jnp.sqrt(deg), 0.0)
    norm = dinv[src] * dinv[dst]
    return jnp.zeros((num_nodes, num_nodes), jnp.float32).at[dst, src].add(norm)


def reference(x, a_sub, a_glob, w1, b1, w2, b2, gamma, beta, eps=1e-5):
    """Pure-JAX reference with the same bf16-operand / f32-accumulate policy."""
    bf16, f32 = jnp.bfloat16, jnp.float32
    ax = jnp.dot(a_sub.astype(bf16), x.astype(bf16), preferred_element_type=f32)
    h = jnp.maximum(jnp.dot(ax.astype(bf16), w1.astype(bf16),
                            preferred_element_type=f32) + b1, 0.0)
    ah = jnp.dot(a_glob.astype(bf16), h.astype(bf16), preferred_element_type=f32)
    g = jnp.maximum(jnp.dot(ah.astype(bf16), w2.astype(bf16),
                            preferred_element_type=f32) + b2, 0.0)
    mean = g.mean(axis=0, keepdims=True)
    var = jnp.maximum((g * g).mean(axis=0, keepdims=True) - mean * mean, 0.0)
    return (g - mean) * jax.lax.rsqrt(var + eps) * gamma + beta


if __name__ == "__main__":
    key = jax.random.PRNGKey(0)
    k_x, k_e, k_se, k_w1, k_w2, k_b1, k_b2, k_g, k_b = jax.random.split(key, 9)

    N, D = 300, 32           # num_nodes, embed_dim (padded to 384 x 128 inside)
    E, E_SUB = 1500, 800     # global / subgraph edge counts

    x = jax.random.normal(k_x, (N, D), dtype=jnp.float32)
    edge_index = jax.random.randint(k_e, (2, E), 0, N, dtype=jnp.int32)
    subgraph_edge_index = jax.random.randint(k_se, (2, E_SUB), 0, N, dtype=jnp.int32)

    # GCNConv weights (glorot-ish), biases, BatchNorm affine
    w1 = jax.random.normal(k_w1, (D, D), dtype=jnp.float32) / jnp.sqrt(D)
    b1 = 0.1 * jax.random.normal(k_b1, (1, D), dtype=jnp.float32)
    w2 = jax.random.normal(k_w2, (D, D), dtype=jnp.float32) / jnp.sqrt(D)
    b2 = 0.1 * jax.random.normal(k_b2, (1, D), dtype=jnp.float32)
    gamma = 1.0 + 0.1 * jax.random.normal(k_g, (1, D), dtype=jnp.float32)
    beta = 0.1 * jax.random.normal(k_b, (1, D), dtype=jnp.float32)

    a_sub = gcn_norm_adj(subgraph_edge_index, N)
    a_glob = gcn_norm_adj(edge_index, N)

    ref = reference(x, a_sub, a_glob, w1, b1, w2, b2, gamma, beta)

    # Fused (single-kernel) path — default at small sizes.
    out_fused = spatial_extractor(x, a_sub, a_glob, w1, b1, w2, b2, gamma, beta)
    out_fused = jax.block_until_ready(out_fused)
    assert out_fused.shape == (N, D)
    assert jnp.allclose(out_fused, ref, atol=2e-3, rtol=2e-3), \
        float(jnp.max(jnp.abs(out_fused - ref)))

    # Row-tiled fallback path (used for graphs too large for VMEM residency).
    out_tiled = spatial_extractor(x, a_sub, a_glob, w1, b1, w2, b2, gamma, beta,
                                  force_tiled=True)
    out_tiled = jax.block_until_ready(out_tiled)
    assert out_tiled.shape == (N, D)
    assert jnp.allclose(out_tiled, ref, atol=2e-3, rtol=2e-3), \
        float(jnp.max(jnp.abs(out_tiled - ref)))

    print("KERNEL_OK")
</pallas_src>

<mosaic_0001>
module attributes {stable_mosaic.version = 11 : i64} {
  func.func @_fused_kernel(%arg0: i32, %arg1: memref<384x384xbf16, #tpu.memory_space<vmem>>, %arg2: memref<384x384xbf16, #tpu.memory_space<vmem>>, %arg3: memref<384x128xbf16, #tpu.memory_space<vmem>>, %arg4: memref<128x128xbf16, #tpu.memory_space<vmem>>, %arg5: memref<1x128xf32, #tpu.memory_space<vmem>>, %arg6: memref<128x128xbf16, #tpu.memory_space<vmem>>, %arg7: memref<1x128xf32, #tpu.memory_space<vmem>>, %arg8: memref<1x128xf32, #tpu.memory_space<vmem>>, %arg9: memref<1x128xf32, #tpu.memory_space<vmem>>, %arg10: memref<384x128xf32, #tpu.memory_space<vmem>>) attributes {dimension_semantics = [#tpu.dimension_semantics<arbitrary>], iteration_bounds = array<i64: 1>, scalar_prefetch = 0 : i64, scratch_operands = 0 : i64, tpu.core_type = #tpu.core_type<tc>, window_params = [{pipeline_mode = #tpu.pipeline_mode<synchronous>, transform_indices = @transform_0, window_bounds = array<i64: 384, 384>}, {pipeline_mode = #tpu.pipeline_mode<synchronous>, transform_indices = @transform_1, window_bounds = array<i64: 384, 384>}, {pipeline_mode = #tpu.pipeline_mode<synchronous>, transform_indices = @transform_2, window_bounds = array<i64: 384, 128>}, {pipeline_mode = #tpu.pipeline_mode<synchronous>, transform_indices = @transform_3, window_bounds = array<i64: 128, 128>}, {pipeline_mode = #tpu.pipeline_mode<synchronous>, transform_indices = @transform_4, window_bounds = array<i64: 1, 128>}, {pipeline_mode = #tpu.pipeline_mode<synchronous>, transform_indices = @transform_5, window_bounds = array<i64: 128, 128>}, {pipeline_mode = #tpu.pipeline_mode<synchronous>, transform_indices = @transform_6, window_bounds = array<i64: 1, 128>}, {pipeline_mode = #tpu.pipeline_mode<synchronous>, transform_indices = @transform_7, window_bounds = array<i64: 1, 128>}, {pipeline_mode = #tpu.pipeline_mode<synchronous>, transform_indices = @transform_8, window_bounds = array<i64: 1, 128>}, {pipeline_mode = #tpu.pipeline_mode<synchronous>, transform_indices = @transform_9, window_bounds = array<i64: 384, 128>}]} {
    %c0 = arith.constant 0 : index
    %c0_0 = arith.constant 0 : index
    %0 = vector.load %arg1[%c0, %c0_0] : memref<384x384xbf16, #tpu.memory_space<vmem>>, vector<384x384xbf16>
    %c0_1 = arith.constant 0 : index
    %c0_2 = arith.constant 0 : index
    %1 = vector.load %arg3[%c0_1, %c0_2] : memref<384x128xbf16, #tpu.memory_space<vmem>>, vector<384x128xbf16>
    %cst = arith.constant dense<0.000000e+00> : vector<384x128xf32>
    %2 = tpu.matmul %0, %1, %cst {dimension_numbers = #tpu.dot_dimension_numbers<[1], [0], [0], [1], [0, 0, 1, 1], [], []>} : vector<384x384xbf16>, vector<384x128xbf16>, vector<384x128xf32> -> vector<384x128xf32>
    %3 = arith.truncf %2 : vector<384x128xf32> to vector<384x128xbf16>
    %c0_3 = arith.constant 0 : index
    %c0_4 = arith.constant 0 : index
    %4 = vector.load %arg4[%c0_3, %c0_4] : memref<128x128xbf16, #tpu.memory_space<vmem>>, vector<128x128xbf16>
    %cst_5 = arith.constant dense<0.000000e+00> : vector<384x128xf32>
    %5 = tpu.matmul %3, %4, %cst_5 {dimension_numbers = #tpu.dot_dimension_numbers<[1], [0], [0], [1], [0, 0, 1, 1], [], []>} : vector<384x128xbf16>, vector<128x128xbf16>, vector<384x128xf32> -> vector<384x128xf32>
    %c0_6 = arith.constant 0 : index
    %c0_7 = arith.constant 0 : index
    %6 = vector.load %arg5[%c0_6, %c0_7] : memref<1x128xf32, #tpu.memory_space<vmem>>, vector<1x128xf32>
    %7 = vector.broadcast %6 : vector<1x128xf32> to vector<384x128xf32>
    %8 = arith.addf %5, %7 : vector<384x128xf32>
    %cst_8 = arith.constant 0.000000e+00 : f32
    %9 = vector.broadcast %cst_8 : f32 to vector<384x128xf32>
    %10 = arith.maximumf %8, %9 : vector<384x128xf32>
    %c0_9 = arith.constant 0 : index
    %c0_10 = arith.constant 0 : index
    %11 = vector.load %arg2[%c0_9, %c0_10] : memref<384x384xbf16, #tpu.memory_space<vmem>>, vector<384x384xbf16>
    %12 = arith.truncf %10 : vector<384x128xf32> to vector<384x128xbf16>
    %cst_11 = arith.constant dense<0.000000e+00> : vector<384x128xf32>
    %13 = tpu.matmul %11, %12, %cst_11 {dimension_numbers = #tpu.dot_dimension_numbers<[1], [0], [0], [1], [0, 0, 1, 1], [], []>} : vector<384x384xbf16>, vector<384x128xbf16>, vector<384x128xf32> -> vector<384x128xf32>
    %14 = arith.truncf %13 : vector<384x128xf32> to vector<384x128xbf16>
    %c0_12 = arith.constant 0 : index
    %c0_13 = arith.constant 0 : index
    %15 = vector.load %arg6[%c0_12, %c0_13] : memref<128x128xbf16, #tpu.memory_space<vmem>>, vector<128x128xbf16>
    %cst_14 = arith.constant dense<0.000000e+00> : vector<384x128xf32>
    %16 = tpu.matmul %14, %15, %cst_14 {dimension_numbers = #tpu.dot_dimension_numbers<[1], [0], [0], [1], [0, 0, 1, 1], [], []>} : vector<384x128xbf16>, vector<128x128xbf16>, vector<384x128xf32> -> vector<384x128xf32>
    %c0_15 = arith.constant 0 : index
    %c0_16 = arith.constant 0 : index
    %17 = vector.load %arg7[%c0_15, %c0_16] : memref<1x128xf32, #tpu.memory_space<vmem>>, vector<1x128xf32>
    %18 = vector.broadcast %17 : vector<1x128xf32> to vector<384x128xf32>
    %19 = arith.addf %16, %18 : vector<384x128xf32>
    %cst_17 = arith.constant 0.000000e+00 : f32
    %20 = vector.broadcast %cst_17 : f32 to vector<384x128xf32>
    %21 = arith.maximumf %19, %20 : vector<384x128xf32>
    %22 = tpu.iota {dimensions = array<i32: 0>} : vector<384x128xi32>
    %c300_i32 = arith.constant 300 : i32
    %23 = vector.broadcast %c300_i32 : i32 to vector<384x128xi32>
    %24 = arith.cmpi slt, %22, %23 : vector<384x128xi32>
    %cst_18 = arith.constant 0.000000e+00 : f32
    %25 = vector.broadcast %cst_18 : f32 to vector<384x128xf32>
    %26 = arith.select %24, %21, %25 : vector<384x128xi1>, vector<384x128xf32>
    %cst_19 = arith.constant dense<0.000000e+00> : vector<128xf32>
    %27 = vector.multi_reduction <add>, %26, %cst_19 [0] : vector<384x128xf32> to vector<128xf32>
    %28 = vector.shape_cast %27 : vector<128xf32> to vector<1x128xf32>
    %cst_20 = arith.constant 0.00333333341 : f32
    %29 = vector.broadcast %cst_20 : f32 to vector<1x128xf32>
    %30 = arith.mulf %28, %29 : vector<1x128xf32>
    %31 = arith.mulf %26, %26 : vector<384x128xf32>
    %cst_21 = arith.constant dense<0.000000e+00> : vector<128xf32>
    %32 = vector.multi_reduction <add>, %31, %cst_21 [0] : vector<384x128xf32> to vector<128xf32>
    %33 = vector.shape_cast %32 : vector<128xf32> to vector<1x128xf32>
    %cst_22 = arith.constant 0.00333333341 : f32
    %34 = vector.broadcast %cst_22 : f32 to vector<1x128xf32>
    %35 = arith.mulf %33, %34 : vector<1x128xf32>
    %36 = arith.mulf %30, %30 : vector<1x128xf32>
    %37 = arith.subf %35, %36 : vector<1x128xf32>
    %cst_23 = arith.constant 0.000000e+00 : f32
    %38 = vector.broadcast %cst_23 : f32 to vector<1x128xf32>
    %39 = arith.maximumf %37, %38 : vector<1x128xf32>
    %c0_24 = arith.constant 0 : index
    %c0_25 = arith.constant 0 : index
    %40 = vector.load %arg8[%c0_24, %c0_25] : memref<1x128xf32, #tpu.memory_space<vmem>>, vector<1x128xf32>
    %cst_26 = arith.constant 9.99999974E-6 : f32
    %41 = vector.broadcast %cst_26 : f32 to vector<1x128xf32>
    %42 = arith.addf %39, %41 : vector<1x128xf32>
    %43 = math.rsqrt %42 : vector<1x128xf32>
    %44 = arith.mulf %40, %43 : vector<1x128xf32>
    %c0_27 = arith.constant 0 : index
    %c0_28 = arith.constant 0 : index
    %45 = vector.load %arg9[%c0_27, %c0_28] : memref<1x128xf32, #tpu.memory_space<vmem>>, vector<1x128xf32>
    %46 = arith.mulf %30, %44 : vector<1x128xf32>
    %47 = arith.subf %45, %46 : vector<1x128xf32>
    %48 = vector.broadcast %44 : vector<1x128xf32> to vector<384x128xf32>
    %49 = arith.mulf %21, %48 : vector<384x128xf32>
    %50 = vector.broadcast %47 : vector<1x128xf32> to vector<384x128xf32>
    %51 = arith.addf %49, %50 : vector<384x128xf32>
    %c0_29 = arith.constant 0 : index
    %c0_30 = arith.constant 0 : index
    %52 = vector.load %arg10[%c0_29, %c0_30] : memref<384x128xf32, #tpu.memory_space<vmem>>, vector<384x128xf32>
    tpu.vector_store %arg10[%c0_29, %c0_30], %51 {strides = array<i32>} : memref<384x128xf32, #tpu.memory_space<vmem>>, vector<384x128xf32>,
    return
  }
  func.func @transform_0(%arg0: i32) -> (i32, i32) {
    %c0_i32 = arith.constant 0 : i32
    %c0_i32_0 = arith.constant 0 : i32
    %c0_i32_1 = arith.constant 0 : i32
    return %c0_i32, %c0_i32_0 : i32, i32
  }
  func.func @transform_1(%arg0: i32) -> (i32, i32) {
    %c0_i32 = arith.constant 0 : i32
    %c0_i32_0 = arith.constant 0 : i32
    %c0_i32_1 = arith.constant 0 : i32
    return %c0_i32, %c0_i32_0 : i32, i32
  }
  func.func @transform_2(%arg0: i32) -> (i32, i32) {
    %c0_i32 = arith.constant 0 : i32
    %c0_i32_0 = arith.constant 0 : i32
    %c0_i32_1 = arith.constant 0 : i32
    return %c0_i32, %c0_i32_0 : i32, i32
  }
  func.func @transform_3(%arg0: i32) -> (i32, i32) {
    %c0_i32 = arith.constant 0 : i32
    %c0_i32_0 = arith.constant 0 : i32
    %c0_i32_1 = arith.constant 0 : i32
    return %c0_i32, %c0_i32_0 : i32, i32
  }
  func.func @transform_4(%arg0: i32) -> (i32, i32) {
    %c0_i32 = arith.constant 0 : i32
    %c0_i32_0 = arith.constant 0 : i32
    %c0_i32_1 = arith.constant 0 : i32
    return %c0_i32, %c0_i32_0 : i32, i32
  }
  func.func @transform_5(%arg0: i32) -> (i32, i32) {
    %c0_i32 = arith.constant 0 : i32
    %c0_i32_0 = arith.constant 0 : i32
    %c0_i32_1 = arith.constant 0 : i32
    return %c0_i32, %c0_i32_0 : i32, i32
  }
  func.func @transform_6(%arg0: i32) -> (i32, i32) {
    %c0_i32 = arith.constant 0 : i32
    %c0_i32_0 = arith.constant 0 : i32
    %c0_i32_1 = arith.constant 0 : i32
    return %c0_i32, %c0_i32_0 : i32, i32
  }
  func.func @transform_7(%arg0: i32) -> (i32, i32) {
    %c0_i32 = arith.constant 0 : i32
    %c0_i32_0 = arith.constant 0 : i32
    %c0_i32_1 = arith.constant 0 : i32
    return %c0_i32, %c0_i32_0 : i32, i32
  }
  func.func @transform_8(%arg0: i32) -> (i32, i32) {
    %c0_i32 = arith.constant 0 : i32
    %c0_i32_0 = arith.constant 0 : i32
    %c0_i32_1 = arith.constant 0 : i32
    return %c0_i32, %c0_i32_0 : i32, i32
  }
  func.func @transform_9(%arg0: i32) -> (i32, i32) {
    %c0_i32 = arith.constant 0 : i32
    %c0_i32_0 = arith.constant 0 : i32
    %c0_i32_1 = arith.constant 0 : i32
    return %c0_i32, %c0_i32_0 : i32, i32
  }
}

</mosaic_0001>

<bundles_post_ra>
// kernel: spatial_extractor.1
= control target key start
LH: loop header
LB: loop body
LE: loop exit
PB: predicated region body
PF: predicated region fallthrough
CT: control target
= control target key end

     0   :  { %v4137_v0 = vmov 0   ;;  %s5571_s2 = inlined_call_operand.vmem [shape: bf16[384,128], index: 2, kind: input, shape index: {}]   ;;  %s5572_s0 = inlined_call_operand.vmem [shape: bf16[384,384], index: 0, kind: input, shape index: {}]   ;;  %s5573_s3 = inlined_call_operand.vmem [shape: bf16[128,128], index: 3, kind: input, shape index: {}]   ;;  %s5574_s4 = inlined_call_operand.vmem [shape: f32[1,128], index: 4, kind: input, shape index: {}]   ;;  %s5575_s1 = inlined_call_operand.vmem [shape: bf16[384,384], index: 1, kind: input, shape index: {}]   ;;  %s5576_s5 = inlined_call_operand.vmem [shape: bf16[128,128], index: 5, kind: input, shape index: {}]   ;;  %s5577_s6 = inlined_call_operand.vmem [shape: f32[1,128], index: 6, kind: input, shape index: {}]   ;;  %s5578_s7 = inlined_call_operand.vmem [shape: f32[1,128], index: 7, kind: input, shape index: {}]   ;;  %s5579_s8 = inlined_call_operand.vmem [shape: f32[1,128], index: 8, kind: input, shape index: {}]   ;;  %s5580_s9 = inlined_call_operand.vmem [shape: f32[384,128], index: 9, kind: output, shape index: {}]  }
   0x1   :  { %705 = vmatprep.subr.bf16.mxu0 %v4137_v0  ;;  %v3903_v1 = vld [vmem:[%s5571_s2] sm:$0xff]   ;;  %v3904_v2 = vld [vmem:[%s5571_s2 + $0x8] sm:$0xff]   ;;  %v3905_v3 = vld [vmem:[%s5571_s2 + $0x10] sm:$0xff]  }
   0x2   :  { %706 = vmatpush1.bf16.msra.mxu0 %v3903_v1  ;;  %v3911_v4 = vld [vmem:[%s5571_s2 + $0x80] sm:$0xff]   ;;  %v3906_v5 = vld [vmem:[%s5571_s2 + $0x18] sm:$0xff]   ;;  %v3913_v6 = vld [vmem:[%s5571_s2 + $0x88] sm:$0xff]  }
   0x3   :  { %707 = vmatprep.subr.bf16.mxu0 %v4137_v0  ;;  %3630 = vmatprep.subr.bf16.mxu1 %v3911_v4  ;;  %v3915_v7 = vld [vmem:[%s5571_s2 + $0x90] sm:$0xff]   ;;  %v3907_v8 = vld [vmem:[%s5571_s2 + $0x20] sm:$0xff]   ;;  %v3917_v9 = vld [vmem:[%s5571_s2 + $0x98] sm:$0xff]  }
   0x4   :  { %3631 = vmatpush3.bf16.msra.mxu1 %v3911_v4  ;;  %v3908_v10 = vld [vmem:[%s5571_s2 + $0x28] sm:$0xff]   ;;  %v3919_v11 = vld [vmem:[%s5571_s2 + $0xa0] sm:$0xff]   ;;  %v3909_v12 = vld [vmem:[%s5571_s2 + $0x30] sm:$0xff]  }
   0x5   :  { %3632 = vmatprep.subr.bf16.mxu1 %v3913_v6  ;;  %v3921_v13 = vld [vmem:[%s5571_s2 + $0xa8] sm:$0xff]   ;;  %v3910_v15 = vld [vmem:[%s5571_s2 + $0x38] sm:$0xff]   ;;  %v3930_v16 = vld [vmem:[%s5572_s0 + $0x4] ss:$12 sps:$4 sm:$0xff]  }
   0x6   :  { %708 = vmatpush1.bf16.msra.mxu0 %v3904_v2  ;;  %v3927_v14 = vld [vmem:[%s5572_s0 + $0x8] ss:$12 sps:$4 sm:$0xff]   ;;  %737 = vmatprep.mubr.bf16.mxu0 %v3930_v16  ;;  %v3912_v18 = vld [vmem:[%s5571_s2 + $0x40] sm:$0xff]   ;;  %v3925_v19 = vld [vmem:[%s5571_s2 + $0xb8] sm:$0xff]  }
   0x7   :  { %709 = vmatprep.subr.bf16.mxu0 %v4137_v0  ;;  %3646 = vmatprep.mubr.bf16.mxu1 %v3927_v14  ;;  %v3923_v17 = vld [vmem:[%s5571_s2 + $0xb0] sm:$0xff]   ;;  %v3914_v20 = vld [vmem:[%s5571_s2 + $0x48] sm:$0xff]   ;;  %v3935_v23 = vld [vmem:[%s5572_s0 + $0x38] ss:$12 sps:$4 sm:$0xff]  }
   0x8   :  { %3633 = vmatpush3.bf16.msra.mxu1 %v3913_v6  ;;  %v3916_v21 = vld [vmem:[%s5571_s2 + $0x50] sm:$0xff]   ;;  %v3931_v22 = vld [vmem:[%s5572_s0 + $0x20] ss:$12 sps:$4 sm:$0xff]   ;;  %v3918_v24 = vld [vmem:[%s5571_s2 + $0x58] sm:$0xff]  }
   0x9   :  { %3634 = vmatprep.subr.bf16.mxu1 %v3915_v7  ;;  %v3920_v25 = vld [vmem:[%s5571_s2 + $0x60] sm:$0xff]   ;;  %v3938_v26 = vld [vmem:[%s5572_s0 + $0x50] ss:$12 sps:$4 sm:$0xff]   ;;  %v3943_v27 = vld [vmem:[%s5572_s0 + $0x68] ss:$12 sps:$4 sm:$0xff]  }
   0xa   :  { %710 = vmatpush1.bf16.msra.mxu0 %v3905_v3  ;;  %v3922_v28 = vld [vmem:[%s5571_s2 + $0x68] sm:$0xff]   ;;  %v3924_v29 = vld [vmem:[%s5571_s2 + $0x70] sm:$0xff]   ;;  %v3951_v31 = vld [vmem:[%s5572_s0 + $0x98] ss:$12 sps:$4 sm:$0xff]  }
   0xb   :  { %711 = vmatprep.subr.bf16.mxu0 %v4137_v0  ;;  %v3946_v30 = vld [vmem:[%s5572_s0 + $0x80] ss:$12 sps:$4 sm:$0xff]   ;;  %v3926_v32 = vld [vmem:[%s5571_s2 + $0x78] sm:$0xff]   ;;  %v3959_v36 = vld [vmem:[%s5572_s0 + $0xc8] ss:$12 sps:$4 sm:$0xff]  }
   0xc   :  { %3635 = vmatpush3.bf16.msra.mxu1 %v3915_v7  ;;  %v3928_v33 = vld [vmem:[%s5572_s0] ss:$12 sps:$4 sm:$0xff]   ;;  %v3932_v34 = vld [vmem:[%s5572_s0 + $0x1c] ss:$12 sps:$4 sm:$0xff]   ;;  %v3934_v37 = vld [vmem:[%s5572_s0 + $0x18] ss:$12 sps:$4 sm:$0xff]  }
   0xd   :  { %3636 = vmatprep.subr.bf16.mxu1 %v3917_v9  ;;  %v3954_v35 = vld [vmem:[%s5572_s0 + $0xb0] ss:$12 sps:$4 sm:$0xff]   ;;  %v3936_v38 = vld [vmem:[%s5572_s0 + $0x34] ss:$12 sps:$4 sm:$0xff]   ;;  %v3967_v40 = vld [vmem:[%s5572_s0 + $0xf8] ss:$12 sps:$4 sm:$0xff]  }
   0xe   :  { %712 = vmatpush1.bf16.msra.mxu0 %v3906_v5  ;;  %v3962_v39 = vld [vmem:[%s5572_s0 + $0xe0] ss:$12 sps:$4 sm:$0xff]   ;;  %v3939_v41 = vld [vmem:[%s5572_s0 + $0x30] ss:$12 sps:$4 sm:$0xff]   ;;  %v3975_v44 = vld [vmem:[%s5572_s0 + $0x128] ss:$12 sps:$4 sm:$0xff]  }
   0xf   :  { %713 = vmatprep.subr.bf16.mxu0 %v4137_v0  ;;  %v3940_v42 = vld [vmem:[%s5572_s0 + $0x4c] ss:$12 sps:$4 sm:$0xff]   ;;  %v3970_v43 = vld [vmem:[%s5572_s0 + $0x110] ss:$12 sps:$4 sm:$0xff]   ;;  %v3942_v45 = vld [vmem:[%s5572_s0 + $0x48] ss:$12 sps:$4 sm:$0xff]  }
  0x10   :  { %3637 = vmatpush3.bf16.msra.mxu1 %v3917_v9  ;;  %v3944_v46 = vld [vmem:[%s5572_s0 + $0x64] ss:$12 sps:$4 sm:$0xff]   ;;  %v3978_v47 = vld [vmem:[%s5572_s0 + $0x140] ss:$12 sps:$4 sm:$0xff]   ;;  %v3948_v50 = vld [vmem:[%s5572_s0 + $0x7c] ss:$12 sps:$4 sm:$0xff]  }
  0x11   :  { %3638 = vmatprep.subr.bf16.mxu1 %v3919_v11  ;;  %v3983_v48 = vld [vmem:[%s5572_s0 + $0x158] ss:$12 sps:$4 sm:$0xff]   ;;  %v3947_v49 = vld [vmem:[%s5572_s0 + $0x60] ss:$12 sps:$4 sm:$0xff]   ;;  %v3986_v51 = vld [vmem:[%s5572_s0 + $0x170] ss:$12 sps:$4 sm:$0xff]  }
  0x12   :  { %714 = vmatpush1.bf16.msra.mxu0 %v3907_v8  ;;  %v3991_v52 = vld [vmem:[%s5572_s0 + $0x188] ss:$12 sps:$4 sm:$0xff]   ;;  %v3950_v53 = vld [vmem:[%s5572_s0 + $0x78] ss:$12 sps:$4 sm:$0xff]   ;;  %v3994_v55 = vld [vmem:[%s5572_s0 + $0x1a0] ss:$12 sps:$4 sm:$0xff]  }
  0x13   :  { %715 = vmatprep.subr.bf16.mxu0 %v4137_v0  ;;  %v3952_v54 = vld [vmem:[%s5572_s0 + $0x94] ss:$12 sps:$4 sm:$0xff]   ;;  %v4005_v56 = vld [vmem:[%s5572_s0 + $0x1b8] ss:$12 sps:$4 sm:$0xff]   ;;  %v3955_v57 = vld [vmem:[%s5572_s0 + $0x90] ss:$12 sps:$4 sm:$0xff]  }
  0x14   :  { %3639 = vmatpush3.bf16.msra.mxu1 %v3919_v11  ;;  %v3956_v58 = vld [vmem:[%s5572_s0 + $0xac] ss:$12 sps:$4 sm:$0xff]   ;;  %v4006_v59 = vld [vmem:[%s5572_s0 + $0x1d0] ss:$12 sps:$4 sm:$0xff]   ;;  %v4013_v60 = vld [vmem:[%s5572_s0 + $0x1e8] ss:$12 sps:$4 sm:$0xff]  }
  0x15   :  { %3640 = vmatprep.subr.bf16.mxu1 %v3921_v13  ;;  %v4019_v61 = vld [vmem:[%s5573_s3] sm:$0xff]   ;;  %v3958_v62 = vld [vmem:[%s5572_s0 + $0xa8] ss:$12 sps:$4 sm:$0xff]   ;;  %v4026_v6 = vld [vmem:[%s5573_s3 + $0x18] sm:$0xff]  }
  0x16   :  { %716 = vmatpush1.bf16.msra.mxu0 %v3908_v10  ;;  %v3960_v63 = vld [vmem:[%s5572_s0 + $0xc4] ss:$12 sps:$4 sm:$0xff]   ;;  %v4014_v1 = vld [vmem:[%s5572_s0 + $0x200] ss:$12 sps:$4 sm:$0xff]   ;;  %v3964_v7 = vld [vmem:[%s5572_s0 + $0xdc] ss:$12 sps:$4 sm:$0xff]  }
  0x17   :  { %717 = vmatprep.subr.bf16.mxu0 %v4137_v0  ;;  %v4018_v2 = vld [vmem:[%s5572_s0 + $0x218] ss:$12 sps:$4 sm:$0xff]   ;;  %v4024_v3 = vld [vmem:[%s5573_s3 + $0x8] sm:$0xff]   ;;  %v4025_v4 = vld [vmem:[%s5573_s3 + $0x10] sm:$0xff]  }
  0x18   :  { %3641 = vmatpush3.bf16.msra.mxu1 %v3921_v13  ;;  %v3963_v5 = vld [vmem:[%s5572_s0 + $0xc0] ss:$12 sps:$4 sm:$0xff]   ;;  %v4020_v8 = vld [vmem:[%s5572_s0 + $0x230] ss:$12 sps:$4 sm:$0xff]   ;;  %v3966_v10 = vld [vmem:[%s5572_s0 + $0xd8] ss:$12 sps:$4 sm:$0xff]  }
  0x19   :  { %3642 = vmatprep.subr.bf16.mxu1 %v3923_v17  ;;  %v4027_v9 = vld [vmem:[%s5573_s3 + $0x20] sm:$0xff]   ;;  %v3972_v13 = vld [vmem:[%s5572_s0 + $0x10c] ss:$12 sps:$4 sm:$0xff]   ;;  %v3974_v14 = vld [vmem:[%s5572_s0 + $0x108] ss:$12 sps:$4 sm:$0xff]  }
  0x1a   :  { %718 = vmatpush1.bf16.msra.mxu0 %v3909_v12  ;;  %v3968_v11 = vld [vmem:[%s5572_s0 + $0xf4] ss:$12 sps:$4 sm:$0xff]   ;;  %v3971_v12 = vld [vmem:[%s5572_s0 + $0xf0] ss:$12 sps:$4 sm:$0xff]  }
  0x1b   :  { %719 = vmatprep.subr.bf16.mxu0 %v4137_v0  ;;  %v3976_v16 = vld [vmem:[%s5572_s0 + $0x124] ss:$12 sps:$4 sm:$0xff]  }
  0x1c   :  { %3643 = vmatpush3.bf16.msra.mxu1 %v3923_v17  ;;  %v4029_v17 = vld [vmem:[%s5573_s3 + $0x30] sm:$0xff]  }
  0x1d   :  { %3644 = vmatprep.subr.bf16.mxu1 %v3925_v19 }
  0x1e   :  { %720 = vmatpush1.bf16.msra.mxu0 %v3910_v15  ;;  %v4028_v15 = vld [vmem:[%s5573_s3 + $0x28] sm:$0xff]  }
  0x1f   :  { %721 = vmatprep.subr.bf16.mxu0 %v4137_v0 }
  0x20   :  { %3645 = vmatpush3.bf16.msra.mxu1 %v3925_v19  ;;  %v4030_v19 = vld [vmem:[%s5573_s3 + $0x38] sm:$0xff]  }
  0x21   :  { %3694 = vmatprep.subr.bf16.mxu1 %v4019_v61 }
  0x22   :  { %722 = vmatpush1.bf16.msra.mxu0 %v3912_v18  ;;  %v3979_v18 = vld [vmem:[%s5572_s0 + $0x120] ss:$12 sps:$4 sm:$0xff]  }
  0x23   :  { %723 = vmatprep.subr.bf16.mxu0 %v4137_v0  ;;  %3647 = vmatmul.mubr.bf16.vlgmr.msra.gmra.mrb[0].mxu1 %v3931_v22  ;;  %v3984_v22 = vld [vmem:[%s5572_s0 + $0x154] ss:$12 sps:$4 sm:$0xff]  }
  0x24   :  { %3650 = vmatprep.mubr.bf16.mxu1 %v3935_v23  ;;  %3695 = vmatpush3.bf16.msra.mxu1 %v4019_v61  ;;  %v3987_v23 = vld [vmem:[%s5572_s0 + $0x150] ss:$12 sps:$4 sm:$0xff]  }
  0x25   :  { %3696 = vmatprep.subr.bf16.mxu1 %v4024_v3 }
  0x26   :  { %724 = vmatpush1.bf16.msra.mxu0 %v3914_v20  ;;  %v3980_v20 = vld [vmem:[%s5572_s0 + $0x13c] ss:$12 sps:$4 sm:$0xff]  }
  0x27   :  { %725 = vmatprep.subr.bf16.mxu0 %v4137_v0 }
  0x28   :  { %3697 = vmatpush3.bf16.msra.mxu1 %v4024_v3 }
  0x29   :  { %3698 = vmatprep.subr.bf16.mxu1 %v4025_v4 }
  0x2a   :  { %726 = vmatpush1.bf16.msra.mxu0 %v3916_v21  ;;  %v3982_v21 = vld [vmem:[%s5572_s0 + $0x138] ss:$12 sps:$4 sm:$0xff]  }
  0x2b   :  { %727 = vmatprep.subr.bf16.mxu0 %v4137_v0  ;;  %3651 = vmatmul.mubr.bf16.gmra.mrb[4].mxu1 %v3938_v26  ;;  %v3992_v26 = vld [vmem:[%s5572_s0 + $0x184] ss:$12 sps:$4 sm:$0xff]  }
  0x2c   :  { %3654 = vmatprep.mubr.bf16.mxu1 %v3943_v27  ;;  %3699 = vmatpush3.bf16.msra.mxu1 %v4025_v4  ;;  %v3995_v27 = vld [vmem:[%s5572_s0 + $0x180] ss:$12 sps:$4 sm:$0xff]  }
  0x2d   :  { %3700 = vmatprep.subr.bf16.mxu1 %v4026_v6 }
  0x2e   :  { %728 = vmatpush1.bf16.msra.mxu0 %v3918_v24  ;;  %v3988_v24 = vld [vmem:[%s5572_s0 + $0x16c] ss:$12 sps:$4 sm:$0xff]  }
  0x2f   :  { %729 = vmatprep.subr.bf16.mxu0 %v4137_v0 }
  0x30   :  { %3701 = vmatpush3.bf16.msra.mxu1 %v4026_v6 }
  0x31   :  { %3702 = vmatprep.subr.bf16.mxu1 %v4027_v9 }
  0x32   :  { %730 = vmatpush1.bf16.msra.mxu0 %v3920_v25  ;;  %v3990_v25 = vld [vmem:[%s5572_s0 + $0x168] ss:$12 sps:$4 sm:$0xff]  }
  0x33   :  { %731 = vmatprep.subr.bf16.mxu0 %v4137_v0  ;;  %3655 = vmatmul.mubr.bf16.gmra.mrb[8].mxu1 %v3946_v30  ;;  %v3999_v30 = vld [vmem:[%s5572_s0 + $0x1b4] ss:$12 sps:$4 sm:$0xff]  }
  0x34   :  { %3658 = vmatprep.mubr.bf16.mxu1 %v3951_v31  ;;  %3703 = vmatpush3.bf16.msra.mxu1 %v4027_v9  ;;  %v4001_v31 = vld [vmem:[%s5572_s0 + $0x1b0] ss:$12 sps:$4 sm:$0xff]  }
  0x35   :  { %3704 = vmatprep.subr.bf16.mxu1 %v4028_v15 }
  0x36   :  { %732 = vmatpush1.bf16.msra.mxu0 %v3922_v28  ;;  %v3996_v28 = vld [vmem:[%s5572_s0 + $0x19c] ss:$12 sps:$4 sm:$0xff]  }
  0x37   :  { %733 = vmatprep.subr.bf16.mxu0 %v4137_v0 }
  0x38   :  { %3705 = vmatpush3.bf16.msra.mxu1 %v4028_v15 }
  0x39   :  { %3706 = vmatprep.subr.bf16.mxu1 %v4029_v17 }
  0x3a   :  { %734 = vmatpush1.bf16.msra.mxu0 %v3924_v29  ;;  %v3998_v29 = vld [vmem:[%s5572_s0 + $0x198] ss:$12 sps:$4 sm:$0xff]  }
  0x3b   :  { %735 = vmatprep.subr.bf16.mxu0 %v4137_v0  ;;  %3659 = vmatmul.mubr.bf16.gmra.mrb[12].mxu1 %v3954_v35  ;;  %v4009_v35 = vld [vmem:[%s5572_s0 + $0x1e0] ss:$12 sps:$4 sm:$0xff]  }
  0x3c   :  { %3662 = vmatprep.mubr.bf16.mxu1 %v3959_v36  ;;  %3707 = vmatpush3.bf16.msra.mxu1 %v4029_v17  ;;  %v4010_v36 = vld [vmem:[%s5572_s0 + $0x1fc] ss:$12 sps:$4 sm:$0xff]  }
  0x3d   :  { %3708 = vmatprep.subr.bf16.mxu1 %v4030_v19 }
  0x3e   :  { %736 = vmatpush1.bf16.msra.mxu0 %v3926_v32  ;;  %v4002_v32 = vld [vmem:[%s5572_s0 + $0x1cc] ss:$12 sps:$4 sm:$0xff]  }
  0x40   :  { %3709 = vmatpush3.bf16.msra.mxu1 %v4030_v19 }
  0x41   :  { %738 = vmatmul.mubr.bf16.vlgmr.msra.gmra.mrb[0].mxu0 %v3928_v33  ;;  %2027 = vmatprep.subr.bf16.mxu1 %v4137_v0  ;;  %v4004_v33 = vld [vmem:[%s5572_s0 + $0x1c8] ss:$12 sps:$4 sm:$0xff]  }
  0x42   :  { %745 = vmatprep.mubr.bf16.mxu0 %v3932_v34  ;;  %v4007_v34 = vld [vmem:[%s5572_s0 + $0x1e4] ss:$12 sps:$4 sm:$0xff]  }
  0x43   :  { %3663 = vmatmul.mubr.bf16.gmra.mrb[16].mxu1 %v3962_v39  ;;  %v4017_v39 = vld [vmem:[%s5572_s0 + $0x210] ss:$12 sps:$4 sm:$0xff]  }
  0x44   :  { %3666 = vmatprep.mubr.bf16.mxu1 %v3967_v40  ;;  %v4021_v40 = vld [vmem:[%s5572_s0 + $0x22c] ss:$12 sps:$4 sm:$0xff]  }
  0x49   :  { %746 = vmatmul.mubr.bf16.gmra.mrb[4].mxu0 %v3934_v37  ;;  %v4012_v37 = vld [vmem:[%s5572_s0 + $0x1f8] ss:$12 sps:$4 sm:$0xff]  }
  0x4a   :  { %753 = vmatprep.mubr.bf16.mxu0 %v3936_v38  ;;  %v4015_v38 = vld [vmem:[%s5572_s0 + $0x214] ss:$12 sps:$4 sm:$0xff]  }
  0x4b   :  { %3667 = vmatmul.mubr.bf16.gmra.mrb[20].mxu1 %v3970_v43 }
  0x4c   :  { %3670 = vmatprep.mubr.bf16.mxu1 %v3975_v44 }
  0x51   :  { %754 = vmatmul.mubr.bf16.gmra.mrb[8].mxu0 %v3939_v41  ;;  %v4023_v41 = vld [vmem:[%s5572_s0 + $0x228] ss:$12 sps:$4 sm:$0xff]  }
  0x52   :  { %761 = vmatprep.mubr.bf16.mxu0 %v3940_v42 }
  0x53   :  { %3671 = vmatmul.mubr.bf16.gmra.mrb[24].mxu1 %v3978_v47 }
  0x54   :  { %3674 = vmatprep.mubr.bf16.mxu1 %v3983_v48 }
  0x59   :  { %762 = vmatmul.mubr.bf16.gmra.mrb[12].mxu0 %v3942_v45 }
  0x5a   :  { %769 = vmatprep.mubr.bf16.mxu0 %v3944_v46 }
  0x5b   :  { %3675 = vmatmul.mubr.bf16.gmra.mrb[28].mxu1 %v3986_v51 }
  0x5c   :  { %3678 = vmatprep.mubr.bf16.mxu1 %v3991_v52 }
  0x61   :  { %770 = vmatmul.mubr.bf16.gmra.mrb[16].mxu0 %v3947_v49 }
  0x62   :  { %777 = vmatprep.mubr.bf16.mxu0 %v3948_v50 }
  0x63   :  { %3679 = vmatmul.mubr.bf16.gmra.mrb[32].mxu1 %v3994_v55 }
  0x64   :  { %3682 = vmatprep.mubr.bf16.mxu1 %v4005_v56 }
  0x69   :  { %778 = vmatmul.mubr.bf16.gmra.mrb[20].mxu0 %v3950_v53 }
  0x6a   :  { %785 = vmatprep.mubr.bf16.mxu0 %v3952_v54 }
  0x6b   :  { %3683 = vmatmul.mubr.bf16.gmra.mrb[36].mxu1 %v4006_v59 }
  0x6c   :  { %3686 = vmatprep.mubr.bf16.mxu1 %v4013_v60 }
  0x71   :  { %786 = vmatmul.mubr.bf16.gmra.mrb[24].mxu0 %v3955_v57 }
  0x72   :  { %793 = vmatprep.mubr.bf16.mxu0 %v3956_v58 }
  0x73   :  { %3687 = vmatmul.mubr.bf16.gmra.mrb[40].mxu1 %v4014_v1 }
  0x74   :  { %3690 = vmatprep.mubr.bf16.mxu1 %v4018_v2 }
  0x79   :  { %794 = vmatmul.mubr.bf16.gmra.mrb[28].mxu0 %v3958_v62 }
  0x7a   :  { %801 = vmatprep.mubr.bf16.mxu0 %v3960_v63 }
  0x7b   :  { %3691 = vmatmul.mubr.bf16.gmra.mrb[44].mxu1 %v4020_v8 }
  0x81   :  { %802 = vmatmul.mubr.bf16.gmra.mrb[32].mxu0 %v3963_v5 }
  0x82   :  { %809 = vmatprep.mubr.bf16.mxu0 %v3964_v7 }
  0x89   :  { %810 = vmatmul.mubr.bf16.gmra.mrb[36].mxu0 %v3966_v10 }
  0x8a   :  { %817 = vmatprep.mubr.bf16.mxu0 %v3968_v11 }
  0x91   :  { %818 = vmatmul.mubr.bf16.gmra.mrb[40].mxu0 %v3971_v12 }
  0x92   :  { %825 = vmatprep.mubr.bf16.mxu0 %v3972_v13 }
  0x99   :  { %826 = vmatmul.mubr.bf16.gmra.mrb[44].mxu0 %v3974_v14 }
  0x9a   :  { %833 = vmatprep.mubr.bf16.mxu0 %v3976_v16 }
  0xa1   :  { %834 = vmatmul.mubr.bf16.gmra.mrb[48].mxu0 %v3979_v18 }
  0xa2   :  { %841 = vmatprep.mubr.bf16.mxu0 %v3980_v20 }
  0xa9   :  { %842 = vmatmul.mubr.bf16.gmra.mrb[52].mxu0 %v3982_v21 }
  0xaa   :  { %849 = vmatprep.mubr.bf16.mxu0 %v3984_v22 }
  0xb1   :  { %850 = vmatmul.mubr.bf16.gmra.mrb[56].mxu0 %v3987_v23 }
  0xb2   :  { %857 = vmatprep.mubr.bf16.mxu0 %v3988_v24 }
  0xb9   :  { %858 = vmatmul.mubr.bf16.gmra.mrb[60].mxu0 %v3990_v25 }
  0xba   :  { %865 = vmatprep.mubr.bf16.mxu0 %v3992_v26 }
  0xc1   :  { %866 = vmatmul.mubr.bf16.gmra.mrb[64].mxu0 %v3995_v27 }
  0xc2   :  { %873 = vmatprep.mubr.bf16.mxu0 %v3996_v28 }
  0xc9   :  { %874 = vmatmul.mubr.bf16.gmra.mrb[68].mxu0 %v3998_v29 }
  0xca   :  { %881 = vmatprep.mubr.bf16.mxu0 %v3999_v30 }
  0xd1   :  { %882 = vmatmul.mubr.bf16.gmra.mrb[72].mxu0 %v4001_v31 }
  0xd2   :  { %889 = vmatprep.mubr.bf16.mxu0 %v4002_v32 }
  0xd9   :  { %890 = vmatmul.mubr.bf16.gmra.mrb[76].mxu0 %v4004_v33 }
  0xda   :  { %897 = vmatprep.mubr.bf16.mxu0 %v4007_v34 }
  0xe1   :  { %898 = vmatmul.mubr.bf16.gmra.mrb[80].mxu0 %v4009_v35 }
  0xe2   :  { %905 = vmatprep.mubr.bf16.mxu0 %v4010_v36 }
  0xe9   :  { %906 = vmatmul.mubr.bf16.gmra.mrb[84].mxu0 %v4012_v37 }
  0xea   :  { %913 = vmatprep.mubr.bf16.mxu0 %v4015_v38 }
  0xf1   :  { %914 = vmatmul.mubr.bf16.gmra.mrb[88].mxu0 %v4017_v39 }
  0xf2   :  { %921 = vmatprep.mubr.bf16.mxu0 %v4021_v40 }
  0xf6   :  { %v3648_v42 = vpop.f32.mrb[0].mxu1 }
  0xf7   :  { %v964_v43 = vpop.f32.mrb[1].mxu1 }
  0xf8   :  { %v3649_v44 = vpop.f32.mrb[2].mxu1 }
  0xf9   :  { %922 = vmatmul.mubr.bf16.gmra.mrb[92].mxu0 %v4023_v41  ;;  %v967_v45 = vpop.f32.mrb[3].mxu1 }
  0xfe   :  { %v3652_v46 = vpop.f32.mrb[4].mxu1 }
  0xff   :  { %v980_v47 = vpop.f32.mrb[5].mxu1 }
 0x100   :  { %v3653_v48 = vpop.f32.mrb[6].mxu1 }
 0x101   :  { %v983_v49 = vpop.f32.mrb[7].mxu1 }
 0x106   :  { %v4517_v50 = vpop.f32.mrb[8].mxu1 }
 0x107   :  { %v996_v51 = vpop.f32.mrb[9].mxu1 }
 0x108   :  { %v4519_v52 = vpop.f32.mrb[10].mxu1 }
 0x109   :  { %v999_v53 = vpop.f32.mrb[11].mxu1 }
 0x10e   :  { %v4521_v57 = vpop.f32.mrb[12].mxu1 }
 0x10f   :  { %v4523_v59 = vpop.f32.mrb[13].mxu1 }
 0x110   :  { %v4525_v62 = vpop.f32.mrb[14].mxu1 }
 0x111   :  { %v4527_v63 = vpop.f32.mrb[15].mxu1 }
 0x114   :  { %v739_v54 = vpop.f32.mrb[0].mxu0 }
 0x115   :  { %v965_v55 = vadd.f32 %v964_v43, %v739_v54  ;;  %v741_v56 = vpop.f32.mrb[1].mxu0 }
 0x116   :  { %v742_v58 = vpop.f32.mrb[2].mxu0  ;;  %v4529_v5 = vpop.f32.mrb[16].mxu1 }
 0x117   :  { %v968_v60 = vadd.f32 %v967_v45, %v742_v58  ;;  %v744_v61 = vpop.f32.mrb[3].mxu0  ;;  %v4531_v7 = vpop.f32.mrb[17].mxu1 }
 0x118   :  { %v4533_v10 = vpop.f32.mrb[18].mxu1 }
 0x119   :  { %v1155_v1 = vpack.c.bf16 %v968_v60, %v965_v55  ;;  %v4535_v11 = vpop.f32.mrb[19].mxu1 }
 0x11b   :  { %3710 = vmatprep.mubr.bf16.mxu1 %v1155_v1 }
 0x11c   :  { %v747_v2 = vpop.f32.mrb[4].mxu0 }
 0x11d   :  { %v973_v3 = vadd.f32 %v3648_v42, %v747_v2  ;;  %v749_v4 = vpop.f32.mrb[5].mxu0 }
 0x11e   :  { %v750_v6 = vpop.f32.mrb[6].mxu0  ;;  %v4537_v16 = vpop.f32.mrb[20].mxu1 }
 0x11f   :  { %v976_v8 = vadd.f32 %v3649_v44, %v750_v6  ;;  %v752_v9 = vpop.f32.mrb[7].mxu0  ;;  %v4539_v18 = vpop.f32.mrb[21].mxu1 }
 0x120   :  { %v4541_v21 = vpop.f32.mrb[22].mxu1 }
 0x121   :  { %v1156_v12 = vpack.c.bf16 %v976_v8, %v973_v3  ;;  %v4543_v22 = vpop.f32.mrb[23].mxu1 }
 0x123   :  { %3711 = vmatmul.mubr.bf16.vlgmr.msra.gmra.mrb[48].mxu1 %v1156_v12 }
 0x124   :  { %v755_v13 = vpop.f32.mrb[8].mxu0 }
 0x125   :  { %v981_v14 = vadd.f32 %v980_v47, %v755_v13  ;;  %v757_v15 = vpop.f32.mrb[9].mxu0 }
 0x126   :  { %v758_v17 = vpop.f32.mrb[10].mxu0  ;;  %v4545_v27 = vpop.f32.mrb[24].mxu1 }
 0x127   :  { %v984_v19 = vadd.f32 %v983_v49, %v758_v17  ;;  %v760_v20 = vpop.f32.mrb[11].mxu0  ;;  %v4547_v29 = vpop.f32.mrb[25].mxu1 }
 0x128   :  { %v4549_v32 = vpop.f32.mrb[26].mxu1 }
 0x129   :  { %v1157_v23 = vpack.c.bf16 %v984_v19, %v981_v14  ;;  %v4551_v33 = vpop.f32.mrb[27].mxu1 }
 0x12b   :  { %3714 = vmatprep.mubr.bf16.mxu1 %v1157_v23 }
 0x12c   :  { %v763_v24 = vpop.f32.mrb[12].mxu0 }
 0x12d   :  { %v989_v25 = vadd.f32 %v3652_v46, %v763_v24  ;;  %v765_v26 = vpop.f32.mrb[13].mxu0 }
 0x12e   :  { %v766_v28 = vpop.f32.mrb[14].mxu0  ;;  %v4553_v38 = vpop.f32.mrb[28].mxu1 }
 0x12f   :  { %v992_v30 = vadd.f32 %v3653_v48, %v766_v28  ;;  %v768_v31 = vpop.f32.mrb[15].mxu0  ;;  %v4555_v40 = vpop.f32.mrb[29].mxu1 }
 0x130   :  { %v4557_v43 = vpop.f32.mrb[30].mxu1 }
 0x131   :  { %v1158_v34 = vpack.c.bf16 %v992_v30, %v989_v25  ;;  %v4559_v44 = vpop.f32.mrb[31].mxu1 }
 0x133   :  { %3715 = vmatmul.mubr.bf16.gmra.mrb[52].mxu1 %v1158_v34 }
 0x134   :  { %v771_v35 = vpop.f32.mrb[16].mxu0 }
 0x135   :  { %v997_v36 = vadd.f32 %v996_v51, %v771_v35  ;;  %v773_v37 = vpop.f32.mrb[17].mxu0 }
 0x136   :  { %v774_v39 = vpop.f32.mrb[18].mxu0  ;;  %v4562_v49 = vpop.f32.mrb[32].mxu1 }
 0x137   :  { %v1000_v41 = vadd.f32 %v999_v53, %v774_v39  ;;  %v776_v42 = vpop.f32.mrb[19].mxu0  ;;  %v4564_v54 = vpop.f32.mrb[33].mxu1 }
 0x138   :  { %v4567_v53 = vpop.f32.mrb[34].mxu1 }
 0x139   :  { %v1159_v45 = vpack.c.bf16 %v1000_v41, %v997_v36  ;;  %v4569_v58 = vpop.f32.mrb[35].mxu1 }
 0x13b   :  { %3718 = vmatprep.mubr.bf16.mxu1 %v1159_v45 }
 0x13c   :  { %v779_v46 = vpop.f32.mrb[20].mxu0 }
 0x13d   :  { %v1005_v47 = vadd.f32 %v4517_v50, %v779_v46  ;;  %v781_v48 = vpop.f32.mrb[21].mxu0 }
 0x13e   :  { %v782_v51 = vpop.f32.mrb[22].mxu0  ;;  %v4572_v50 = vpop.f32.mrb[36].mxu1 }
 0x13f   :  { %v1008_v55 = vadd.f32 %v4519_v52, %v782_v51  ;;  %v784_v56 = vpop.f32.mrb[23].mxu0  ;;  %v4574_v4 = vpop.f32.mrb[37].mxu1 }
 0x140   :  { %v4577_v52 = vpop.f32.mrb[38].mxu1 }
 0x141   :  { %v1160_v60 = vpack.c.bf16 %v1008_v55, %v1005_v47  ;;  %v4579_v9 = vpop.f32.mrb[39].mxu1 }
 0x143   :  { %3719 = vmatmul.mubr.bf16.gmra.mrb[56].mxu1 %v1160_v60 }
 0x144   :  { %v787_v61 = vpop.f32.mrb[24].mxu0 }
 0x145   :  { %v1013_v1 = vadd.f32 %v4523_v59, %v787_v61  ;;  %v789_v2 = vpop.f32.mrb[25].mxu0 }
 0x146   :  { %v790_v3 = vpop.f32.mrb[26].mxu0  ;;  %v4582_v59 = vpop.f32.mrb[40].mxu1 }
 0x147   :  { %v1016_v6 = vadd.f32 %v4527_v63, %v790_v3  ;;  %v792_v8 = vpop.f32.mrb[27].mxu0  ;;  %v4584_v19 = vpop.f32.mrb[41].mxu1 }
 0x148   :  { %v4587_v63 = vpop.f32.mrb[42].mxu1 }
 0x149   :  { %v1161_v12 = vpack.c.bf16 %v1016_v6, %v1013_v1  ;;  %v4589_v24 = vpop.f32.mrb[43].mxu1 }
 0x14b   :  { %3722 = vmatprep.mubr.bf16.mxu1 %v1161_v12 }
 0x14c   :  { %v795_v13 = vpop.f32.mrb[28].mxu0 }
 0x14d   :  { %v1021_v14 = vadd.f32 %v4521_v57, %v795_v13  ;;  %v797_v15 = vpop.f32.mrb[29].mxu0 }
 0x14e   :  { %v798_v17 = vpop.f32.mrb[30].mxu0  ;;  %v4592_v57 = vpop.f32.mrb[44].mxu1 }
 0x14f   :  { %v1024_v20 = vadd.f32 %v4525_v62, %v798_v17  ;;  %v800_v23 = vpop.f32.mrb[31].mxu0  ;;  %v4594_v34 = vpop.f32.mrb[45].mxu1 }
 0x150   :  { %v4597_v62 = vpop.f32.mrb[46].mxu1 }
 0x151   :  { %v1162_v25 = vpack.c.bf16 %v1024_v20, %v1021_v14  ;;  %v4599_v37 = vpop.f32.mrb[47].mxu1 }
 0x153   :  { %3723 = vmatmul.mubr.bf16.gmra.mrb[60].mxu1 %v1162_v25 }
 0x154   :  { %v803_v26 = vpop.f32.mrb[32].mxu0 }
 0x155   :  { %v1029_v28 = vadd.f32 %v4531_v7, %v803_v26  ;;  %v805_v30 = vpop.f32.mrb[33].mxu0 }
 0x156   :  { %v806_v31 = vpop.f32.mrb[34].mxu0 }
 0x157   :  { %v1032_v35 = vadd.f32 %v4535_v11, %v806_v31  ;;  %v808_v36 = vpop.f32.mrb[35].mxu0 }
 0x159   :  { %v1163_v39 = vpack.c.bf16 %v1032_v35, %v1029_v28 }
 0x15b   :  { %3726 = vmatprep.mubr.bf16.mxu1 %v1163_v39 }
 0x15c   :  { %v811_v41 = vpop.f32.mrb[36].mxu0 }
 0x15d   :  { %v1037_v42 = vadd.f32 %v4529_v5, %v811_v41  ;;  %v813_v45 = vpop.f32.mrb[37].mxu0 }
 0x15e   :  { %v814_v7 = vpop.f32.mrb[38].mxu0 }
 0x15f   :  { %v1040_v46 = vadd.f32 %v4533_v10, %v814_v7  ;;  %v816_v47 = vpop.f32.mrb[39].mxu0 }
 0x161   :  { %v1164_v48 = vpack.c.bf16 %v1040_v46, %v1037_v42 }
 0x163   :  { %3727 = vmatmul.mubr.bf16.gmra.mrb[64].mxu1 %v1164_v48 }
 0x164   :  { %v819_v51 = vpop.f32.mrb[40].mxu0 }
 0x165   :  { %v1045_v11 = vadd.f32 %v4539_v18, %v819_v51  ;;  %v821_v55 = vpop.f32.mrb[41].mxu0 }
 0x166   :  { %v822_v56 = vpop.f32.mrb[42].mxu0 }
 0x167   :  { %v1048_v60 = vadd.f32 %v4543_v22, %v822_v56  ;;  %v824_v61 = vpop.f32.mrb[43].mxu0 }
 0x169   :  { %v1165_v1 = vpack.c.bf16 %v1048_v60, %v1045_v11 }
 0x16b   :  { %3730 = vmatprep.mubr.bf16.mxu1 %v1165_v1 }
 0x16c   :  { %v827_v2 = vpop.f32.mrb[44].mxu0 }
 0x16d   :  { %v1053_v5 = vadd.f32 %v4537_v16, %v827_v2  ;;  %v829_v3 = vpop.f32.mrb[45].mxu0 }
 0x16e   :  { %v830_v6 = vpop.f32.mrb[46].mxu0 }
 0x16f   :  { %v1056_v10 = vadd.f32 %v4541_v21, %v830_v6  ;;  %v832_v8 = vpop.f32.mrb[47].mxu0 }
 0x171   :  { %v1166_v12 = vpack.c.bf16 %v1056_v10, %v1053_v5 }
 0x173   :  { %3731 = vmatmul.mubr.bf16.gmra.mrb[68].mxu1 %v1166_v12 }
 0x174   :  { %v835_v13 = vpop.f32.mrb[48].mxu0 }
 0x175   :  { %v1061_v18 = vadd.f32 %v4547_v29, %v835_v13  ;;  %v837_v14 = vpop.f32.mrb[49].mxu0 }
 0x176   :  { %v838_v15 = vpop.f32.mrb[50].mxu0 }
 0x177   :  { %v1064_v22 = vadd.f32 %v4551_v33, %v838_v15  ;;  %v840_v17 = vpop.f32.mrb[51].mxu0 }
 0x179   :  { %v1167_v20 = vpack.c.bf16 %v1064_v22, %v1061_v18 }
 0x17b   :  { %3734 = vmatprep.mubr.bf16.mxu1 %v1167_v20 }
 0x17c   :  { %v843_v23 = vpop.f32.mrb[52].mxu0 }
 0x17d   :  { %v1069_v16 = vadd.f32 %v4545_v27, %v843_v23  ;;  %v845_v25 = vpop.f32.mrb[53].mxu0 }
 0x17e   :  { %v846_v26 = vpop.f32.mrb[54].mxu0 }
 0x17f   :  { %v1072_v21 = vadd.f32 %v4549_v32, %v846_v26  ;;  %v848_v28 = vpop.f32.mrb[55].mxu0 }
 0x181   :  { %v1168_v30 = vpack.c.bf16 %v1072_v21, %v1069_v16 }
 0x183   :  { %3735 = vmatmul.mubr.bf16.gmra.mrb[72].mxu1 %v1168_v30 }
 0x184   :  { %v851_v31 = vpop.f32.mrb[56].mxu0 }
 0x185   :  { %v1077_v29 = vadd.f32 %v4555_v40, %v851_v31  ;;  %v853_v35 = vpop.f32.mrb[57].mxu0 }
 0x186   :  { %v854_v36 = vpop.f32.mrb[58].mxu0 }
 0x187   :  { %v1080_v33 = vadd.f32 %v4559_v44, %v854_v36  ;;  %v856_v39 = vpop.f32.mrb[59].mxu0 }
 0x189   :  { %v1169_v41 = vpack.c.bf16 %v1080_v33, %v1077_v29 }
 0x18b   :  { %3738 = vmatprep.mubr.bf16.mxu1 %v1169_v41 }
 0x18c   :  { %v859_v42 = vpop.f32.mrb[60].mxu0 }
 0x18d   :  { %v1085_v27 = vadd.f32 %v4553_v38, %v859_v42  ;;  %v861_v45 = vpop.f32.mrb[61].mxu0 }
 0x18e   :  { %v862_v7 = vpop.f32.mrb[62].mxu0 }
 0x18f   :  { %v1088_v32 = vadd.f32 %v4557_v43, %v862_v7  ;;  %v864_v46 = vpop.f32.mrb[63].mxu0 }
 0x191   :  { %v1170_v47 = vpack.c.bf16 %v1088_v32, %v1085_v27 }
 0x193   :  { %3739 = vmatmul.mubr.bf16.gmra.mrb[76].mxu1 %v1170_v47 }
 0x194   :  { %v867_v48 = vpop.f32.mrb[64].mxu0 }
 0x195   :  { %v1093_v40 = vadd.f32 %v4564_v54, %v867_v48  ;;  %v869_v51 = vpop.f32.mrb[65].mxu0 }
 0x196   :  { %v870_v11 = vpop.f32.mrb[66].mxu0 }
 0x197   :  { %v1096_v44 = vadd.f32 %v4569_v58, %v870_v11  ;;  %v872_v55 = vpop.f32.mrb[67].mxu0 }
 0x199   :  { %v1171_v56 = vpack.c.bf16 %v1096_v44, %v1093_v40 }
 0x19b   :  { %3742 = vmatprep.mubr.bf16.mxu1 %v1171_v56 }
 0x19c   :  { %v875_v60 = vpop.f32.mrb[68].mxu0 }
 0x19d   :  { %v1101_v38 = vadd.f32 %v4562_v49, %v875_v60  ;;  %v877_v61 = vpop.f32.mrb[69].mxu0 }
 0x19e   :  { %v878_v1 = vpop.f32.mrb[70].mxu0 }
 0x19f   :  { %v1104_v43 = vadd.f32 %v4567_v53, %v878_v1  ;;  %v880_v2 = vpop.f32.mrb[71].mxu0 }
 0x1a1   :  { %v1172_v5 = vpack.c.bf16 %v1104_v43, %v1101_v38 }
 0x1a3   :  { %3743 = vmatmul.mubr.bf16.gmra.mrb[80].mxu1 %v1172_v5 }
 0x1a4   :  { %v883_v3 = vpop.f32.mrb[72].mxu0 }
 0x1a5   :  { %v885_v6 = vpop.f32.mrb[73].mxu0  ;;  %v1109_v54 = vadd.f32 %v4574_v4, %v883_v3 }
 0x1a6   :  { %v886_v10 = vpop.f32.mrb[74].mxu0 }
 0x1a7   :  { %v888_v8 = vpop.f32.mrb[75].mxu0  ;;  %v1112_v58 = vadd.f32 %v4579_v9, %v886_v10 }
 0x1a9   :  { %v1173_v12 = vpack.c.bf16 %v1112_v58, %v1109_v54 }
 0x1ab   :  { %3746 = vmatprep.mubr.bf16.mxu1 %v1173_v12 }
 0x1ac   :  { %v891_v13 = vpop.f32.mrb[76].mxu0 }
 0x1ad   :  { %v1117_v49 = vadd.f32 %v4572_v50, %v891_v13  ;;  %v893_v18 = vpop.f32.mrb[77].mxu0 }
 0x1ae   :  { %v894_v14 = vpop.f32.mrb[78].mxu0 }
 0x1af   :  { %v1120_v53 = vadd.f32 %v4577_v52, %v894_v14  ;;  %v896_v15 = vpop.f32.mrb[79].mxu0 }
 0x1b1   :  { %v1174_v22 = vpack.c.bf16 %v1120_v53, %v1117_v49 }
 0x1b3   :  { %3747 = vmatmul.mubr.bf16.gmra.mrb[84].mxu1 %v1174_v22 }
 0x1b4   :  { %v899_v17 = vpop.f32.mrb[80].mxu0 }
 0x1b5   :  { %v901_v20 = vpop.f32.mrb[81].mxu0  ;;  %v1125_v4 = vadd.f32 %v4584_v19, %v899_v17 }
 0x1b6   :  { %v902_v23 = vpop.f32.mrb[82].mxu0 }
 0x1b7   :  { %v904_v16 = vpop.f32.mrb[83].mxu0  ;;  %v1128_v9 = vadd.f32 %v4589_v24, %v902_v23 }
 0x1b9   :  { %v1175_v25 = vpack.c.bf16 %v1128_v9, %v1125_v4 }
 0x1bb   :  { %3750 = vmatprep.mubr.bf16.mxu1 %v1175_v25 }
 0x1bc   :  { %v907_v26 = vpop.f32.mrb[84].mxu0 }
 0x1bd   :  { %v1133_v50 = vadd.f32 %v4582_v59, %v907_v26  ;;  %v909_v21 = vpop.f32.mrb[85].mxu0 }
 0x1be   :  { %v910_v28 = vpop.f32.mrb[86].mxu0 }
 0x1bf   :  { %v1136_v52 = vadd.f32 %v4587_v63, %v910_v28  ;;  %v912_v30 = vpop.f32.mrb[87].mxu0 }
 0x1c1   :  { %v1176_v31 = vpack.c.bf16 %v1136_v52, %v1133_v50 }
 0x1c3   :  { %3751 = vmatmul.mubr.bf16.gmra.mrb[88].mxu1 %v1176_v31 }
 0x1c4   :  { %v915_v29 = vpop.f32.mrb[88].mxu0 }
 0x1c5   :  { %v917_v35 = vpop.f32.mrb[89].mxu0  ;;  %v1141_v19 = vadd.f32 %v4594_v34, %v915_v29  ;;  %v4634_v34 = vld [vmem:[%s5574_s4] ss:$0 sm:$0xff] }
 0x1c6   :  { %v918_v36 = vpop.f32.mrb[90].mxu0 }
 0x1c7   :  { %v920_v33 = vpop.f32.mrb[91].mxu0  ;;  %v1144_v24 = vadd.f32 %v4599_v37, %v918_v36  ;;  %v4033_v37 = vld [vmem:[%s5575_s1 + $0x4] ss:$12 sps:$4 sm:$0xff]  }
 0x1c9   :  { %v1177_v39 = vpack.c.bf16 %v1144_v24, %v1141_v19 }
 0x1cb   :  { %3754 = vmatprep.mubr.bf16.mxu1 %v1177_v39 }
 0x1cc   :  { %v923_v41 = vpop.f32.mrb[92].mxu0 }
 0x1cd   :  { %v1149_v59 = vadd.f32 %v4592_v57, %v923_v41  ;;  %v925_v42 = vpop.f32.mrb[93].mxu0 }
 0x1ce   :  { %v926_v27 = vpop.f32.mrb[94].mxu0  ;;  %v4061_v42 = vld [vmem:[%s5575_s1 + $0x8] ss:$12 sps:$4 sm:$0xff]  }
 0x1cf   :  { %v1152_v63 = vadd.f32 %v4597_v62, %v926_v27  ;;  %v928_v45 = vpop.f32.mrb[95].mxu0  ;;  %3774 = vmatprep.mubr.bf16.mxu0 %v4061_v42 }
 0x1d1   :  { %v1178_v7 = vpack.c.bf16 %v1152_v63, %v1149_v59 }
 0x1d3   :  { %3755 = vmatmul.mubr.bf16.gmra.mrb[92].mxu1 %v1178_v7 }
 0x1d4   :  { %2059 = vmatprep.mubr.bf16.mxu1 %v4033_v37 }
 0x1f6   :  { %v3712_v32 = vpop.f32.mrb[48].mxu1 }
 0x1f7   :  { %v1293_v57 = vadd.f32 %v3712_v32, %v4634_v34  ;;  %v1284_v46 = vpop.f32.mrb[49].mxu1 }
 0x1f8   :  { %v1285_v47 = vadd.f32 %v4634_v34, %v1284_v46  ;;  %v3713_v62 = vpop.f32.mrb[50].mxu1 }
 0x1f9   :  { %v1296_v48 = vadd.f32 %v3713_v62, %v4634_v34  ;;  %v1287_v40 = vpop.f32.mrb[51].mxu1  ;;  %v1477_v51 = vmax.f32 %v1293_v57, 0.0 }
 0x1fa   :  { %v1288_v11 = vadd.f32 %v4634_v34, %v1287_v40  ;;  %v1475_v55 = vmax.f32 %v1285_v47, 0.0 }
 0x1fb   :  { %v1478_v44 = vmax.f32 %v1296_v48, 0.0 }
 0x1fc   :  { %v1476_v56 = vmax.f32 %v1288_v11, 0.0 }
 0x1fd   :  { %v1620_v60 = vpack.c.bf16 %v1478_v44, %v1477_v51 }
 0x1fe   :  { %v1619_v38 = vpack.c.bf16 %v1476_v56, %v1475_v55 }
 0x200   :  { %2028 = vmatpush1.bf16.msra.mxu1 %v1619_v38 }
 0x201   :  { %2029 = vmatprep.subr.bf16.mxu1 %v4137_v0 }
 0x204   :  { %2030 = vmatpush1.bf16.msra.mxu1 %v1620_v60 }
 0x205   :  { %2031 = vmatprep.subr.bf16.mxu1 %v4137_v0 }
 0x206   :  { %v3716_v61 = vpop.f32.mrb[52].mxu1 }
 0x207   :  { %v1309_v1 = vadd.f32 %v3716_v61, %v4634_v34  ;;  %v1300_v43 = vpop.f32.mrb[53].mxu1 }
 0x208   :  { %v1301_v2 = vadd.f32 %v4634_v34, %v1300_v43  ;;  %v3717_v5 = vpop.f32.mrb[54].mxu1 }
 0x209   :  { %v1481_v3 = vmax.f32 %v1309_v1, 0.0  ;;  %v1312_v6 = vadd.f32 %v3717_v5, %v4634_v34  ;;  %v1303_v54 = vpop.f32.mrb[55].mxu1 }
 0x20a   :  { %v1479_v10 = vmax.f32 %v1301_v2, 0.0  ;;  %v1304_v8 = vadd.f32 %v4634_v34, %v1303_v54 }
 0x20b   :  { %v1482_v58 = vmax.f32 %v1312_v6, 0.0 }
 0x20c   :  { %v1480_v12 = vmax.f32 %v1304_v8, 0.0 }
 0x20d   :  { %v1622_v13 = vpack.c.bf16 %v1482_v58, %v1481_v3 }
 0x20e   :  { %v1621_v49 = vpack.c.bf16 %v1480_v12, %v1479_v10 }
 0x210   :  { %2032 = vmatpush1.bf16.msra.mxu1 %v1621_v49 }
 0x211   :  { %2033 = vmatprep.subr.bf16.mxu1 %v4137_v0 }
 0x214   :  { %2034 = vmatpush1.bf16.msra.mxu1 %v1622_v13 }
 0x215   :  { %2035 = vmatprep.subr.bf16.mxu1 %v4137_v0 }
 0x216   :  { %v3720_v18 = vpop.f32.mrb[56].mxu1 }
 0x217   :  { %v1325_v14 = vadd.f32 %v3720_v18, %v4634_v34  ;;  %v1316_v53 = vpop.f32.mrb[57].mxu1 }
 0x218   :  { %v1317_v15 = vadd.f32 %v4634_v34, %v1316_v53  ;;  %v3721_v22 = vpop.f32.mrb[58].mxu1 }
 0x219   :  { %v1328_v17 = vadd.f32 %v3721_v22, %v4634_v34  ;;  %v1319_v20 = vpop.f32.mrb[59].mxu1  ;;  %v1485_v23 = vmax.f32 %v1325_v14, 0.0 }
 0x21a   :  { %v1320_v4 = vadd.f32 %v4634_v34, %v1319_v20  ;;  %v1483_v9 = vmax.f32 %v1317_v15, 0.0 }
 0x21b   :  { %v1486_v16 = vmax.f32 %v1328_v17, 0.0 }
 0x21c   :  { %v1484_v25 = vmax.f32 %v1320_v4, 0.0 }
 0x21d   :  { %v1624_v26 = vpack.c.bf16 %v1486_v16, %v1485_v23 }
 0x21e   :  { %v1623_v50 = vpack.c.bf16 %v1484_v25, %v1483_v9 }
 0x220   :  { %2036 = vmatpush1.bf16.msra.mxu1 %v1623_v50 }
 0x221   :  { %2037 = vmatprep.subr.bf16.mxu1 %v4137_v0 }
 0x224   :  { %2038 = vmatpush1.bf16.msra.mxu1 %v1624_v26 }
 0x225   :  { %2039 = vmatprep.subr.bf16.mxu1 %v4137_v0 }
 0x226   :  { %v3724_v21 = vpop.f32.mrb[60].mxu1 }
 0x227   :  { %v1341_v28 = vadd.f32 %v3724_v21, %v4634_v34  ;;  %v1332_v52 = vpop.f32.mrb[61].mxu1 }
 0x228   :  { %v1333_v30 = vadd.f32 %v4634_v34, %v1332_v52  ;;  %v3725_v31 = vpop.f32.mrb[62].mxu1 }
 0x229   :  { %v1344_v29 = vadd.f32 %v3725_v31, %v4634_v34  ;;  %v1335_v35 = vpop.f32.mrb[63].mxu1  ;;  %v1489_v36 = vmax.f32 %v1341_v28, 0.0 }
 0x22a   :  { %v1336_v19 = vadd.f32 %v4634_v34, %v1335_v35  ;;  %v1487_v24 = vmax.f32 %v1333_v30, 0.0 }
 0x22b   :  { %v1490_v33 = vmax.f32 %v1344_v29, 0.0 }
 0x22c   :  { %v1488_v39 = vmax.f32 %v1336_v19, 0.0 }
 0x22d   :  { %v1626_v41 = vpack.c.bf16 %v1490_v33, %v1489_v36  ;;  %v4031_v33 = vld [vmem:[%s5575_s1] ss:$12 sps:$4 sm:$0xff]  }
 0x22e   :  { %v1625_v59 = vpack.c.bf16 %v1488_v39, %v1487_v24  ;;  %v4034_v24 = vld [vmem:[%s5575_s1 + $0x1c] ss:$12 sps:$4 sm:$0xff]  }
 0x230   :  { %2040 = vmatpush1.bf16.msra.mxu1 %v1625_v59 }
 0x231   :  { %2041 = vmatprep.subr.bf16.mxu1 %v4137_v0 }
 0x234   :  { %2042 = vmatpush1.bf16.msra.mxu1 %v1626_v41 }
 0x235   :  { %2043 = vmatprep.subr.bf16.mxu1 %v4137_v0 }
 0x236   :  { %v3728_v27 = vpop.f32.mrb[64].mxu1 }
 0x237   :  { %v1357_v63 = vadd.f32 %v3728_v27, %v4634_v34  ;;  %v1348_v45 = vpop.f32.mrb[65].mxu1 }
 0x238   :  { %v1349_v7 = vadd.f32 %v4634_v34, %v1348_v45  ;;  %v3729_v37 = vpop.f32.mrb[66].mxu1 }
 0x239   :  { %v1360_v32 = vadd.f32 %v3729_v37, %v4634_v34  ;;  %v1351_v57 = vpop.f32.mrb[67].mxu1  ;;  %v1493_v47 = vmax.f32 %v1357_v63, 0.0 }
 0x23a   :  { %v1352_v46 = vadd.f32 %v4634_v34, %v1351_v57  ;;  %v1491_v48 = vmax.f32 %v1349_v7, 0.0  ;;  %v4036_v57 = vld [vmem:[%s5575_s1 + $0x18] ss:$12 sps:$4 sm:$0xff]  }
 0x23b   :  { %v1494_v62 = vmax.f32 %v1360_v32, 0.0 }
 0x23c   :  { %v1492_v40 = vmax.f32 %v1352_v46, 0.0 }
 0x23d   :  { %v1628_v51 = vpack.c.bf16 %v1494_v62, %v1493_v47 }
 0x23e   :  { %v1627_v11 = vpack.c.bf16 %v1492_v40, %v1491_v48  ;;  %v4037_v48 = vld [vmem:[%s5575_s1 + $0x34] ss:$12 sps:$4 sm:$0xff]   ;;  %v4039_v40 = vld [vmem:[%s5575_s1 + $0x30] ss:$12 sps:$4 sm:$0xff]  }
 0x240   :  { %2044 = vmatpush1.bf16.msra.mxu1 %v1627_v11 }
 0x241   :  { %2045 = vmatprep.subr.bf16.mxu1 %v4137_v0 }
 0x244   :  { %2046 = vmatpush1.bf16.msra.mxu1 %v1628_v51  ;;  %v4040_v51 = vld [vmem:[%s5575_s1 + $0x4c] ss:$12 sps:$4 sm:$0xff]  }
 0x245   :  { %2047 = vmatprep.subr.bf16.mxu1 %v4137_v0 }
 0x246   :  { %v3732_v44 = vpop.f32.mrb[68].mxu1 }
 0x247   :  { %v1373_v55 = vadd.f32 %v3732_v44, %v4634_v34  ;;  %v1364_v56 = vpop.f32.mrb[69].mxu1 }
 0x248   :  { %v1365_v60 = vadd.f32 %v4634_v34, %v1364_v56  ;;  %v3733_v38 = vpop.f32.mrb[70].mxu1 }
 0x249   :  { %v1376_v61 = vadd.f32 %v3733_v38, %v4634_v34  ;;  %v1367_v1 = vpop.f32.mrb[71].mxu1  ;;  %v1497_v2 = vmax.f32 %v1373_v55, 0.0 }
 0x24a   :  { %v1368_v43 = vadd.f32 %v4634_v34, %v1367_v1  ;;  %v1495_v3 = vmax.f32 %v1365_v60, 0.0 }
 0x24b   :  { %v1498_v5 = vmax.f32 %v1376_v61, 0.0 }
 0x24c   :  { %v1496_v6 = vmax.f32 %v1368_v43, 0.0 }
 0x24d   :  { %v1630_v54 = vpack.c.bf16 %v1498_v5, %v1497_v2  ;;  %v4042_v5 = vld [vmem:[%s5575_s1 + $0x48] ss:$12 sps:$4 sm:$0xff]  }
 0x24e   :  { %v1629_v10 = vpack.c.bf16 %v1496_v6, %v1495_v3  ;;  %v4043_v6 = vld [vmem:[%s5575_s1 + $0x64] ss:$12 sps:$4 sm:$0xff]  }
 0x250   :  { %2048 = vmatpush1.bf16.msra.mxu1 %v1629_v10 }
 0x251   :  { %2049 = vmatprep.subr.bf16.mxu1 %v4137_v0 }
 0x254   :  { %2050 = vmatpush1.bf16.msra.mxu1 %v1630_v54 }
 0x255   :  { %2051 = vmatprep.subr.bf16.mxu1 %v4137_v0 }
 0x256   :  { %v3736_v8 = vpop.f32.mrb[72].mxu1 }
 0x257   :  { %v1389_v58 = vadd.f32 %v3736_v8, %v4634_v34  ;;  %v1380_v12 = vpop.f32.mrb[73].mxu1 }
 0x258   :  { %v1381_v13 = vadd.f32 %v4634_v34, %v1380_v12  ;;  %v3737_v49 = vpop.f32.mrb[74].mxu1  ;;  %v4046_v12 = vld [vmem:[%s5575_s1 + $0x7c] ss:$12 sps:$4 sm:$0xff]  }
 0x259   :  { %v1392_v18 = vadd.f32 %v3737_v49, %v4634_v34  ;;  %v1383_v14 = vpop.f32.mrb[75].mxu1  ;;  %v1501_v15 = vmax.f32 %v1389_v58, 0.0  ;;  %v4045_v58 = vld [vmem:[%s5575_s1 + $0x60] ss:$12 sps:$4 sm:$0xff]  }
 0x25a   :  { %v1384_v53 = vadd.f32 %v4634_v34, %v1383_v14  ;;  %v1499_v17 = vmax.f32 %v1381_v13, 0.0 }
 0x25b   :  { %v1502_v22 = vmax.f32 %v1392_v18, 0.0 }
 0x25c   :  { %v1500_v20 = vmax.f32 %v1384_v53, 0.0 }
 0x25d   :  { %v1632_v4 = vpack.c.bf16 %v1502_v22, %v1501_v15 }
 0x25e   :  { %v1631_v23 = vpack.c.bf16 %v1500_v20, %v1499_v17 }
 0x260   :  { %2052 = vmatpush1.bf16.msra.mxu1 %v1631_v23  ;;  %v4048_v23 = vld [vmem:[%s5575_s1 + $0x78] ss:$12 sps:$4 sm:$0xff]  }
 0x261   :  { %2053 = vmatprep.subr.bf16.mxu1 %v4137_v0 }
 0x264   :  { %2054 = vmatpush1.bf16.msra.mxu1 %v1632_v4 }
 0x265   :  { %2055 = vmatprep.subr.bf16.mxu1 %v4137_v0 }
 0x266   :  { %v3740_v16 = vpop.f32.mrb[76].mxu1 }
 0x267   :  { %v1405_v9 = vadd.f32 %v3740_v16, %v4634_v34  ;;  %v1396_v25 = vpop.f32.mrb[77].mxu1 }
 0x268   :  { %v1397_v26 = vadd.f32 %v4634_v34, %v1396_v25  ;;  %v3741_v50 = vpop.f32.mrb[78].mxu1 }
 0x269   :  { %v1408_v21 = vadd.f32 %v3741_v50, %v4634_v34  ;;  %v1399_v28 = vpop.f32.mrb[79].mxu1  ;;  %v1505_v30 = vmax.f32 %v1405_v9, 0.0  ;;  %v4049_v9 = vld [vmem:[%s5575_s1 + $0x94] ss:$12 sps:$4 sm:$0xff]  }
 0x26a   :  { %v1400_v52 = vadd.f32 %v4634_v34, %v1399_v28  ;;  %v1503_v29 = vmax.f32 %v1397_v26, 0.0  ;;  %v4052_v28 = vld [vmem:[%s5575_s1 + $0xac] ss:$12 sps:$4 sm:$0xff]  }
 0x26b   :  { %v1506_v31 = vmax.f32 %v1408_v21, 0.0  ;;  %v4051_v21 = vld [vmem:[%s5575_s1 + $0x90] ss:$12 sps:$4 sm:$0xff]  }
 0x26c   :  { %v1504_v35 = vmax.f32 %v1400_v52, 0.0 }
 0x26d   :  { %v1634_v19 = vpack.c.bf16 %v1506_v31, %v1505_v30 }
 0x26e   :  { %v1633_v36 = vpack.c.bf16 %v1504_v35, %v1503_v29 }
 0x270   :  { %2056 = vmatpush1.bf16.msra.mxu1 %v1633_v36 }
 0x271   :  { %2057 = vmatprep.subr.bf16.mxu1 %v4137_v0 }
 0x274   :  { %2058 = vmatpush1.bf16.msra.mxu1 %v1634_v19 }
 0x276   :  { %v3744_v39 = vpop.f32.mrb[80].mxu1 }
 0x277   :  { %v1421_v41 = vadd.f32 %v3744_v39, %v4634_v34  ;;  %v1412_v59 = vpop.f32.mrb[81].mxu1  ;;  %2060 = vmatmul.mubr.bf16.vlgmr.msra.gmra.mrb[96].mxu1 %v4031_v33 }
 0x278   :  { %v1413_v42 = vadd.f32 %v4634_v34, %v1412_v59  ;;  %v3745_v27 = vpop.f32.mrb[82].mxu1  ;;  %2067 = vmatprep.mubr.bf16.mxu1 %v4034_v24 }
 0x279   :  { %v1509_v63 = vmax.f32 %v1421_v41, 0.0  ;;  %v1424_v0 = vadd.f32 %v3745_v27, %v4634_v34  ;;  %v1415_v45 = vpop.f32.mrb[83].mxu1  ;;  %v4054_v41 = vld [vmem:[%s5575_s1 + $0xa8] ss:$12 sps:$4 sm:$0xff]   ;;  %v4055_v27 = vld [vmem:[%s5575_s1 + $0xc4] ss:$12 sps:$4 sm:$0xff]  }
 0x27a   :  { %v1507_v7 = vmax.f32 %v1413_v42, 0.0  ;;  %v1416_v37 = vadd.f32 %v4634_v34, %v1415_v45  ;;  %v4058_v45 = vld [vmem:[%s5575_s1 + $0xdc] ss:$12 sps:$4 sm:$0xff]  }
 0x27b   :  { %v1510_v32 = vmax.f32 %v1424_v0, 0.0 }
 0x27c   :  { %v1508_v46 = vmax.f32 %v1416_v37, 0.0  ;;  %v4066_v37 = vld [vmem:[%s5575_s1 + $0x38] ss:$12 sps:$4 sm:$0xff]  }
 0x27d   :  { %v1636_v47 = vpack.c.bf16 %v1510_v32, %v1509_v63  ;;  %v4060_v32 = vld [vmem:[%s5575_s1 + $0xd8] ss:$12 sps:$4 sm:$0xff]  }
 0x27e   :  { %v1635_v62 = vpack.c.bf16 %v1508_v46, %v1507_v7  ;;  %v4062_v7 = vld [vmem:[%s5575_s1 + $0x20] ss:$12 sps:$4 sm:$0xff]   ;;  %v4067_v46 = vld [vmem:[%s5575_s1 + $0x50] ss:$12 sps:$4 sm:$0xff]  }
 0x27f   :  { %2068 = vmatmul.mubr.bf16.gmra.mrb[100].mxu1 %v4036_v57  ;;  %v4063_v57 = vld [vmem:[%s5575_s1 + $0xf4] ss:$12 sps:$4 sm:$0xff]  }
 0x280   :  { %3758 = vmatprep.subr.bf16.mxu0 %v1635_v62  ;;  %3886 = vmatprep.subr.bf16.mxu1 %v1635_v62 }
 0x281   :  { %3759 = vmatpush3.bf16.msra.mxu0 %v1635_v62  ;;  %3894 = vmatpush3.bf16.msra.mxu1 %v1635_v62  ;;  %v4127_v62 = vld [vmem:[%s5576_s5] sm:$0xff]  }
 0x282   :  { %3760 = vmatprep.subr.bf16.mxu0 %v1636_v47  ;;  %3887 = vmatprep.subr.bf16.mxu1 %v1636_v47 }
 0x283   :  { %2075 = vmatprep.mubr.bf16.mxu1 %v4037_v48  ;;  %v4065_v48 = vld [vmem:[%s5575_s1 + $0xf0] ss:$12 sps:$4 sm:$0xff]  }
 0x285   :  { %3761 = vmatpush3.bf16.msra.mxu0 %v1636_v47  ;;  %3895 = vmatpush3.bf16.msra.mxu1 %v1636_v47  ;;  %v4071_v47 = vld [vmem:[%s5575_s1 + $0x68] ss:$12 sps:$4 sm:$0xff]  }
 0x286   :  { %v3748_v11 = vpop.f32.mrb[84].mxu1 }
 0x287   :  { %2076 = vmatmul.mubr.bf16.gmra.mrb[104].mxu1 %v4039_v40  ;;  %v1437_v44 = vadd.f32 %v3748_v11, %v4634_v34  ;;  %v1428_v55 = vpop.f32.mrb[85].mxu1  ;;  %v4128_v40 = vld [vmem:[%s5576_s5 + $0x8] sm:$0xff]  }
 0x288   :  { %2083 = vmatprep.mubr.bf16.mxu1 %v4040_v51  ;;  %v1429_v56 = vadd.f32 %v4634_v34, %v1428_v55  ;;  %v3749_v60 = vpop.f32.mrb[86].mxu1  ;;  %v4072_v51 = vld [vmem:[%s5575_s1 + $0x80] ss:$12 sps:$4 sm:$0xff]   ;;  %v4129_v55 = vld [vmem:[%s5576_s5 + $0x10] sm:$0xff]  }
 0x289   :  { %v1513_v38 = vmax.f32 %v1437_v44, 0.0  ;;  %v1440_v61 = vadd.f32 %v3749_v60, %v4634_v34  ;;  %v1431_v1 = vpop.f32.mrb[87].mxu1  ;;  %v4068_v11 = vld [vmem:[%s5575_s1 + $0x10c] ss:$12 sps:$4 sm:$0xff]   ;;  %v4070_v60 = vld [vmem:[%s5575_s1 + $0x108] ss:$12 sps:$4 sm:$0xff]  }
 0x28a   :  { %v1511_v43 = vmax.f32 %v1429_v56, 0.0  ;;  %v1432_v2 = vadd.f32 %v4634_v34, %v1431_v1  ;;  %v4076_v44 = vld [vmem:[%s5575_s1 + $0x98] ss:$12 sps:$4 sm:$0xff]   ;;  %v4081_v1 = vld [vmem:[%s5575_s1 + $0xc8] ss:$12 sps:$4 sm:$0xff]  }
 0x28b   :  { %v1514_v3 = vmax.f32 %v1440_v61, 0.0  ;;  %v4130_v56 = vld [vmem:[%s5576_s5 + $0x18] sm:$0xff]  }
 0x28c   :  { %v1512_v54 = vmax.f32 %v1432_v2, 0.0  ;;  %v4077_v61 = vld [vmem:[%s5575_s1 + $0xb0] ss:$12 sps:$4 sm:$0xff]   ;;  %v4132_v2 = vld [vmem:[%s5576_s5 + $0x28] sm:$0xff]  }
 0x28d   :  { %v1638_v10 = vpack.c.bf16 %v1514_v3, %v1513_v38  ;;  %v4073_v38 = vld [vmem:[%s5575_s1 + $0x124] ss:$12 sps:$4 sm:$0xff]   ;;  %v4078_v3 = vld [vmem:[%s5575_s1 + $0x13c] ss:$12 sps:$4 sm:$0xff]  }
 0x28e   :  { %v1637_v8 = vpack.c.bf16 %v1512_v54, %v1511_v43  ;;  %v4131_v43 = vld [vmem:[%s5576_s5 + $0x20] sm:$0xff]  }
 0x28f   :  { %2084 = vmatmul.mubr.bf16.gmra.mrb[108].mxu1 %v4042_v5  ;;  %v4075_v5 = vld [vmem:[%s5575_s1 + $0x120] ss:$12 sps:$4 sm:$0xff]   ;;  %v4086_v54 = vld [vmem:[%s5575_s1 + $0xf8] ss:$12 sps:$4 sm:$0xff]  }
 0x290   :  { %2091 = vmatprep.mubr.bf16.mxu1 %v4043_v6  ;;  %3762 = vmatprep.subr.bf16.mxu0 %v1637_v8  ;;  %v4082_v6 = vld [vmem:[%s5575_s1 + $0xe0] ss:$12 sps:$4 sm:$0xff]  }
 0x291   :  { %3888 = vmatprep.subr.bf16.mxu1 %v1637_v8  ;;  %3763 = vmatpush3.bf16.msra.mxu0 %v1637_v8 }
 0x292   :  { %3896 = vmatpush3.bf16.msra.mxu1 %v1637_v8  ;;  %3764 = vmatprep.subr.bf16.mxu0 %v1638_v10  ;;  %v4083_v8 = vld [vmem:[%s5575_s1 + $0x154] ss:$12 sps:$4 sm:$0xff]  }
 0x293   :  { %3889 = vmatprep.subr.bf16.mxu1 %v1638_v10 }
 0x295   :  { %3765 = vmatpush3.bf16.msra.mxu0 %v1638_v10 }
 0x296   :  { %3897 = vmatpush3.bf16.msra.mxu1 %v1638_v10  ;;  %v3752_v13 = vpop.f32.mrb[88].mxu1  ;;  %v4080_v10 = vld [vmem:[%s5575_s1 + $0x138] ss:$12 sps:$4 sm:$0xff]  }
 0x297   :  { %2092 = vmatmul.mubr.bf16.gmra.mrb[112].mxu1 %v4045_v58  ;;  %v1453_v49 = vadd.f32 %v3752_v13, %v4634_v34  ;;  %v1444_v18 = vpop.f32.mrb[89].mxu1  ;;  %v4087_v58 = vld [vmem:[%s5575_s1 + $0x110] ss:$12 sps:$4 sm:$0xff]  }
 0x298   :  { %2099 = vmatprep.mubr.bf16.mxu1 %v4046_v12  ;;  %v1445_v14 = vadd.f32 %v4634_v34, %v1444_v18  ;;  %v3753_v53 = vpop.f32.mrb[90].mxu1  ;;  %v4091_v12 = vld [vmem:[%s5575_s1 + $0x128] ss:$12 sps:$4 sm:$0xff]   ;;  %v4085_v13 = vld [vmem:[%s5575_s1 + $0x150] ss:$12 sps:$4 sm:$0xff]  }
 0x299   :  { %v1517_v15 = vmax.f32 %v1453_v49, 0.0  ;;  %v1456_v22 = vadd.f32 %v3753_v53, %v4634_v34  ;;  %v1447_v17 = vpop.f32.mrb[91].mxu1  ;;  %v4088_v49 = vld [vmem:[%s5575_s1 + $0x16c] ss:$12 sps:$4 sm:$0xff]   ;;  %v4090_v53 = vld [vmem:[%s5575_s1 + $0x168] ss:$12 sps:$4 sm:$0xff]  }
 0x29a   :  { %v1515_v20 = vmax.f32 %v1445_v14, 0.0  ;;  %v1448_v4 = vadd.f32 %v4634_v34, %v1447_v17  ;;  %v4092_v18 = vld [vmem:[%s5575_s1 + $0x140] ss:$12 sps:$4 sm:$0xff]   ;;  %v4096_v14 = vld [vmem:[%s5575_s1 + $0x158] ss:$12 sps:$4 sm:$0xff]  }
 0x29b   :  { %v1518_v16 = vmax.f32 %v1456_v22, 0.0  ;;  %v4097_v22 = vld [vmem:[%s5575_s1 + $0x170] ss:$12 sps:$4 sm:$0xff]   ;;  %v4101_v17 = vld [vmem:[%s5575_s1 + $0x188] ss:$12 sps:$4 sm:$0xff]  }
 0x29c   :  { %v1516_v25 = vmax.f32 %v1448_v4, 0.0  ;;  %v4098_v4 = vld [vmem:[%s5575_s1 + $0x19c] ss:$12 sps:$4 sm:$0xff]  }
 0x29d   :  { %v1640_v26 = vpack.c.bf16 %v1518_v16, %v1517_v15  ;;  %v4093_v15 = vld [vmem:[%s5575_s1 + $0x184] ss:$12 sps:$4 sm:$0xff]  }
 0x29e   :  { %v1639_v50 = vpack.c.bf16 %v1516_v25, %v1515_v20  ;;  %v4095_v20 = vld [vmem:[%s5575_s1 + $0x180] ss:$12 sps:$4 sm:$0xff]   ;;  %v4106_v16 = vld [vmem:[%s5575_s1 + $0x1b8] ss:$12 sps:$4 sm:$0xff]  }
 0x29f   :  { %2100 = vmatmul.mubr.bf16.gmra.mrb[116].mxu1 %v4048_v23  ;;  %v4102_v23 = vld [vmem:[%s5575_s1 + $0x1a0] ss:$12 sps:$4 sm:$0xff]  }
 0x2a0   :  { %2107 = vmatprep.mubr.bf16.mxu1 %v4049_v9  ;;  %3766 = vmatprep.subr.bf16.mxu0 %v1639_v50  ;;  %v4100_v9 = vld [vmem:[%s5575_s1 + $0x198] ss:$12 sps:$4 sm:$0xff]   ;;  %v4103_v25 = vld [vmem:[%s5575_s1 + $0x1b4] ss:$12 sps:$4 sm:$0xff]  }
 0x2a1   :  { %3767 = vmatpush3.bf16.msra.mxu0 %v1639_v50  ;;  %3890 = vmatprep.subr.bf16.mxu1 %v1639_v50 }
 0x2a2   :  { %3768 = vmatprep.subr.bf16.mxu0 %v1640_v26  ;;  %3898 = vmatpush3.bf16.msra.mxu1 %v1639_v50  ;;  %v4105_v50 = vld [vmem:[%s5575_s1 + $0x1b0] ss:$12 sps:$4 sm:$0xff]  }
 0x2a3   :  { %3891 = vmatprep.subr.bf16.mxu1 %v1640_v26 }
 0x2a5   :  { %3769 = vmatpush3.bf16.msra.mxu0 %v1640_v26 }
 0x2a6   :  { %v3756_v52 = vpop.f32.mrb[92].mxu1  ;;  %3899 = vmatpush3.bf16.msra.mxu1 %v1640_v26  ;;  %v4107_v26 = vld [vmem:[%s5575_s1 + $0x1d0] ss:$12 sps:$4 sm:$0xff]  }
 0x2a7   :  { %2108 = vmatmul.mubr.bf16.gmra.mrb[120].mxu1 %v4051_v21  ;;  %v1469_v30 = vadd.f32 %v3756_v52, %v4634_v34  ;;  %v1460_v31 = vpop.f32.mrb[93].mxu1  ;;  %v4108_v21 = vld [vmem:[%s5575_s1 + $0x1cc] ss:$12 sps:$4 sm:$0xff]   ;;  %v4110_v52 = vld [vmem:[%s5575_s1 + $0x1c8] ss:$12 sps:$4 sm:$0xff]  }
 0x2a8   :  { %2115 = vmatprep.mubr.bf16.mxu1 %v4052_v28  ;;  %v1461_v29 = vadd.f32 %v4634_v34, %v1460_v31  ;;  %v3757_v35 = vpop.f32.mrb[94].mxu1  ;;  %v4133_v28 = vld [vmem:[%s5576_s5 + $0x30] sm:$0xff]   ;;  %v4134_v31 = vld [vmem:[%s5576_s5 + $0x38] sm:$0xff]  }
 0x2a9   :  { %v1521_v19 = vmax.f32 %v1469_v30, 0.0  ;;  %v1472_v36 = vadd.f32 %v3757_v35, %v4634_v34  ;;  %v1463_v33 = vpop.f32.mrb[95].mxu1  ;;  %v4111_v30 = vld [vmem:[%s5575_s1 + $0x1e4] ss:$12 sps:$4 sm:$0xff]   ;;  %v4114_v35 = vld [vmem:[%s5575_s1 + $0x1fc] ss:$12 sps:$4 sm:$0xff]  }
 0x2aa   :  { %v1519_v24 = vmax.f32 %v1461_v29, 0.0  ;;  %v1464_v39 = vadd.f32 %v4634_v34, %v1463_v33  ;;  %v4057_v34 = vld [vmem:[%s5575_s1 + $0xc0] ss:$12 sps:$4 sm:$0xff]   ;;  %v4119_v33 = vld [vmem:[%s5575_s1 + $0x210] ss:$12 sps:$4 sm:$0xff]  }
 0x2ab   :  { %v1522_v59 = vmax.f32 %v1472_v36, 0.0  ;;  %v4113_v29 = vld [vmem:[%s5575_s1 + $0x1e0] ss:$12 sps:$4 sm:$0xff]  }
 0x2ac   :  { %v1520_v42 = vmax.f32 %v1464_v39, 0.0  ;;  %v4117_v36 = vld [vmem:[%s5575_s1 + $0x214] ss:$12 sps:$4 sm:$0xff]  }
 0x2ad   :  { %v1642_v63 = vpack.c.bf16 %v1522_v59, %v1521_v19  ;;  %v4116_v19 = vld [vmem:[%s5575_s1 + $0x1f8] ss:$12 sps:$4 sm:$0xff]   ;;  %v4122_v39 = vld [vmem:[%s5575_s1 + $0x228] ss:$12 sps:$4 sm:$0xff]   ;;  %v4124_v59 = vld [vmem:[%s5575_s1 + $0x200] ss:$12 sps:$4 sm:$0xff]  }
 0x2ae   :  { %v1641_v0 = vpack.c.bf16 %v1520_v42, %v1519_v24  ;;  %v4120_v24 = vld [vmem:[%s5575_s1 + $0x22c] ss:$12 sps:$4 sm:$0xff]  }
 0x2af   :  { %2116 = vmatmul.mubr.bf16.gmra.mrb[124].mxu1 %v4054_v41  ;;  %v4123_v41 = vld [vmem:[%s5575_s1 + $0x1e8] ss:$12 sps:$4 sm:$0xff]   ;;  %v4125_v42 = vld [vmem:[%s5575_s1 + $0x218] ss:$12 sps:$4 sm:$0xff]  }
 0x2b0   :  { %2123 = vmatprep.mubr.bf16.mxu1 %v4055_v27  ;;  %3770 = vmatprep.subr.bf16.mxu0 %v1641_v0  ;;  %v4126_v27 = vld [vmem:[%s5575_s1 + $0x230] ss:$12 sps:$4 sm:$0xff]  }
 0x2b1   :  { %3771 = vmatpush3.bf16.msra.mxu0 %v1641_v0  ;;  %3892 = vmatprep.subr.bf16.mxu1 %v1641_v0 }
 0x2b2   :  { %3772 = vmatprep.subr.bf16.mxu0 %v1642_v63  ;;  %3900 = vmatpush3.bf16.msra.mxu1 %v1641_v0 }
 0x2b3   :  { %3893 = vmatprep.subr.bf16.mxu1 %v1642_v63 }
 0x2b5   :  { %3773 = vmatpush3.bf16.msra.mxu0 %v1642_v63 }
 0x2b6   :  { %3901 = vmatpush3.bf16.msra.mxu1 %v1642_v63  ;;  %3822 = vmatprep.subr.bf16.mxu0 %v4127_v62 }
 0x2b7   :  { %2124 = vmatmul.mubr.bf16.gmra.mrb[128].mxu1 %v4057_v34 }
 0x2b8   :  { %2131 = vmatprep.mubr.bf16.mxu1 %v4058_v45  ;;  %3775 = vmatmul.mubr.bf16.vlgmr.msra.gmra.mrb[96].mxu0 %v4062_v7 }
 0x2b9   :  { %3778 = vmatprep.mubr.bf16.mxu0 %v4066_v37  ;;  %3823 = vmatpush3.bf16.msra.mxu0 %v4127_v62 }
 0x2ba   :  { %3824 = vmatprep.subr.bf16.mxu0 %v4128_v40 }
 0x2bd   :  { %3825 = vmatpush3.bf16.msra.mxu0 %v4128_v40 }
 0x2be   :  { %3826 = vmatprep.subr.bf16.mxu0 %v4129_v55 }
 0x2bf   :  { %2132 = vmatmul.mubr.bf16.gmra.mrb[132].mxu1 %v4060_v32 }
 0x2c0   :  { %2139 = vmatprep.mubr.bf16.mxu1 %v4063_v57  ;;  %3779 = vmatmul.mubr.bf16.gmra.mrb[100].mxu0 %v4067_v46 }
 0x2c1   :  { %3782 = vmatprep.mubr.bf16.mxu0 %v4071_v47  ;;  %3827 = vmatpush3.bf16.msra.mxu0 %v4129_v55 }
 0x2c2   :  { %3828 = vmatprep.subr.bf16.mxu0 %v4130_v56 }
 0x2c5   :  { %3829 = vmatpush3.bf16.msra.mxu0 %v4130_v56 }
 0x2c6   :  { %3830 = vmatprep.subr.bf16.mxu0 %v4131_v43 }
 0x2c7   :  { %2140 = vmatmul.mubr.bf16.gmra.mrb[136].mxu1 %v4065_v48 }
 0x2c8   :  { %2147 = vmatprep.mubr.bf16.mxu1 %v4068_v11  ;;  %3783 = vmatmul.mubr.bf16.gmra.mrb[104].mxu0 %v4072_v51 }
 0x2c9   :  { %3786 = vmatprep.mubr.bf16.mxu0 %v4076_v44  ;;  %3831 = vmatpush3.bf16.msra.mxu0 %v4131_v43 }
 0x2ca   :  { %3832 = vmatprep.subr.bf16.mxu0 %v4132_v2 }
 0x2cd   :  { %3833 = vmatpush3.bf16.msra.mxu0 %v4132_v2 }
 0x2ce   :  { %3834 = vmatprep.subr.bf16.mxu0 %v4133_v28 }
 0x2cf   :  { %2148 = vmatmul.mubr.bf16.gmra.mrb[140].mxu1 %v4070_v60 }
 0x2d0   :  { %2155 = vmatprep.mubr.bf16.mxu1 %v4073_v38  ;;  %3787 = vmatmul.mubr.bf16.gmra.mrb[108].mxu0 %v4077_v61 }
 0x2d1   :  { %3790 = vmatprep.mubr.bf16.mxu0 %v4081_v1  ;;  %3835 = vmatpush3.bf16.msra.mxu0 %v4133_v28 }
 0x2d2   :  { %3836 = vmatprep.subr.bf16.mxu0 %v4134_v31 }
 0x2d5   :  { %3837 = vmatpush3.bf16.msra.mxu0 %v4134_v31 }
 0x2d7   :  { %2156 = vmatmul.mubr.bf16.gmra.mrb[144].mxu1 %v4075_v5 }
 0x2d8   :  { %2163 = vmatprep.mubr.bf16.mxu1 %v4078_v3  ;;  %3791 = vmatmul.mubr.bf16.gmra.mrb[112].mxu0 %v4082_v6 }
 0x2d9   :  { %3794 = vmatprep.mubr.bf16.mxu0 %v4086_v54 }
 0x2df   :  { %2164 = vmatmul.mubr.bf16.gmra.mrb[148].mxu1 %v4080_v10 }
 0x2e0   :  { %2171 = vmatprep.mubr.bf16.mxu1 %v4083_v8  ;;  %3795 = vmatmul.mubr.bf16.gmra.mrb[116].mxu0 %v4087_v58 }
 0x2e1   :  { %3798 = vmatprep.mubr.bf16.mxu0 %v4091_v12 }
 0x2e7   :  { %2172 = vmatmul.mubr.bf16.gmra.mrb[152].mxu1 %v4085_v13 }
 0x2e8   :  { %2179 = vmatprep.mubr.bf16.mxu1 %v4088_v49  ;;  %3799 = vmatmul.mubr.bf16.gmra.mrb[120].mxu0 %v4092_v18 }
 0x2e9   :  { %3802 = vmatprep.mubr.bf16.mxu0 %v4096_v14 }
 0x2ef   :  { %2180 = vmatmul.mubr.bf16.gmra.mrb[156].mxu1 %v4090_v53 }
 0x2f0   :  { %2187 = vmatprep.mubr.bf16.mxu1 %v4093_v15  ;;  %3803 = vmatmul.mubr.bf16.gmra.mrb[124].mxu0 %v4097_v22 }
 0x2f1   :  { %3806 = vmatprep.mubr.bf16.mxu0 %v4101_v17 }
 0x2f7   :  { %2188 = vmatmul.mubr.bf16.gmra.mrb[160].mxu1 %v4095_v20 }
 0x2f8   :  { %2195 = vmatprep.mubr.bf16.mxu1 %v4098_v4  ;;  %3807 = vmatmul.mubr.bf16.gmra.mrb[128].mxu0 %v4102_v23 }
 0x2f9   :  { %3810 = vmatprep.mubr.bf16.mxu0 %v4106_v16 }
 0x2ff   :  { %2196 = vmatmul.mubr.bf16.gmra.mrb[164].mxu1 %v4100_v9 }
 0x300   :  { %2203 = vmatprep.mubr.bf16.mxu1 %v4103_v25  ;;  %3811 = vmatmul.mubr.bf16.gmra.mrb[132].mxu0 %v4107_v26 }
 0x307   :  { %2204 = vmatmul.mubr.bf16.gmra.mrb[168].mxu1 %v4105_v50 }
 0x308   :  { %2211 = vmatprep.mubr.bf16.mxu1 %v4108_v21 }
 0x30f   :  { %2212 = vmatmul.mubr.bf16.gmra.mrb[172].mxu1 %v4110_v52 }
 0x310   :  { %2219 = vmatprep.mubr.bf16.mxu1 %v4111_v30 }
 0x317   :  { %2220 = vmatmul.mubr.bf16.gmra.mrb[176].mxu1 %v4113_v29 }
 0x318   :  { %2227 = vmatprep.mubr.bf16.mxu1 %v4114_v35 }
 0x31f   :  { %2228 = vmatmul.mubr.bf16.gmra.mrb[180].mxu1 %v4116_v19 }
 0x320   :  { %2235 = vmatprep.mubr.bf16.mxu1 %v4117_v36 }
 0x327   :  { %2236 = vmatmul.mubr.bf16.gmra.mrb[184].mxu1 %v4119_v33 }
 0x328   :  { %2243 = vmatprep.mubr.bf16.mxu1 %v4120_v24 }
 0x32f   :  { %2244 = vmatmul.mubr.bf16.gmra.mrb[188].mxu1 %v4122_v39 }
 0x330   :  { %3814 = vmatprep.mubr.bf16.mxu1 %v4123_v41 }
 0x337   :  { %3815 = vmatmul.mubr.bf16.vlgmr.msra.gmra.mrb[192].mxu1 %v4124_v59 }
 0x338   :  { %3818 = vmatprep.mubr.bf16.mxu1 %v4125_v42 }
 0x33f   :  { %3819 = vmatmul.mubr.bf16.gmra.mrb[196].mxu1 %v4126_v27 }
 0x34a   :  { %v2061_v63 = vpop.f32.mrb[96].mxu1 }
 0x34b   :  { %v2063_v0 = vpop.f32.mrb[97].mxu1 }
 0x34c   :  { %v2064_v34 = vpop.f32.mrb[98].mxu1 }
 0x34d   :  { %v2066_v45 = vpop.f32.mrb[99].mxu1 }
 0x352   :  { %v2069_v7 = vpop.f32.mrb[100].mxu1 }
 0x353   :  { %v2071_v37 = vpop.f32.mrb[101].mxu1 }
 0x354   :  { %v2072_v32 = vpop.f32.mrb[102].mxu1 }
 0x355   :  { %v2074_v57 = vpop.f32.mrb[103].mxu1 }
 0x35a   :  { %v2077_v46 = vpop.f32.mrb[104].mxu1 }
 0x35b   :  { %v2079_v47 = vpop.f32.mrb[105].mxu1 }
 0x35c   :  { %v2080_v62 = vpop.f32.mrb[106].mxu1 }
 0x35d   :  { %v2082_v48 = vpop.f32.mrb[107].mxu1 }
 0x362   :  { %v2085_v40 = vpop.f32.mrb[108].mxu1 }
 0x363   :  { %v2087_v51 = vpop.f32.mrb[109].mxu1 }
 0x364   :  { %v2088_v11 = vpop.f32.mrb[110].mxu1 }
 0x365   :  { %v2090_v44 = vpop.f32.mrb[111].mxu1 }
 0x36a   :  { %v2093_v55 = vpop.f32.mrb[112].mxu1 }
 0x36b   :  { %v2095_v56 = vpop.f32.mrb[113].mxu1 }
 0x36c   :  { %v2096_v60 = vpop.f32.mrb[114].mxu1 }
 0x36d   :  { %v2098_v38 = vpop.f32.mrb[115].mxu1 }
 0x372   :  { %v2101_v61 = vpop.f32.mrb[116].mxu1 }
 0x373   :  { %v2103_v1 = vpop.f32.mrb[117].mxu1 }
 0x374   :  { %v2104_v43 = vpop.f32.mrb[118].mxu1 }
 0x375   :  { %v2106_v2 = vpop.f32.mrb[119].mxu1 }
 0x37a   :  { %v2109_v5 = vpop.f32.mrb[120].mxu1 }
 0x37b   :  { %v2111_v3 = vpop.f32.mrb[121].mxu1 }
 0x37c   :  { %v4939_v6 = vpop.f32.mrb[122].mxu1 }
 0x37d   :  { %v2114_v54 = vpop.f32.mrb[123].mxu1 }
 0x382   :  { %v2117_v10 = vpop.f32.mrb[124].mxu1 }
 0x383   :  { %v2119_v8 = vpop.f32.mrb[125].mxu1 }
 0x384   :  { %v2120_v58 = vpop.f32.mrb[126].mxu1 }
 0x385   :  { %v2122_v12 = vpop.f32.mrb[127].mxu1 }
 0x38a   :  { %v4941_v13 = vpop.f32.mrb[128].mxu1 }
 0x38b   :  { %v3776_v49 = vpop.f32.mrb[96].mxu0  ;;  %v2127_v18 = vpop.f32.mrb[129].mxu1 }
 0x38c   :  { %v2286_v14 = vpop.f32.mrb[97].mxu0  ;;  %v2295_v53 = vadd.f32 %v3776_v49, %v2069_v7  ;;  %v4943_v15 = vpop.f32.mrb[130].mxu1 }
 0x38d   :  { %v2287_v22 = vadd.f32 %v2286_v14, %v2061_v63  ;;  %v3777_v17 = vpop.f32.mrb[98].mxu0  ;;  %v2130_v20 = vpop.f32.mrb[131].mxu1 }
 0x38e   :  { %v2289_v4 = vpop.f32.mrb[99].mxu0  ;;  %v2298_v23 = vadd.f32 %v3777_v17, %v2072_v32 }
 0x38f   :  { %v2290_v16 = vadd.f32 %v2289_v4, %v2064_v34 }
 0x390   :  { %v2478_v9 = vpack.c.bf16 %v2298_v23, %v2295_v53 }
 0x391   :  { %v2477_v25 = vpack.c.bf16 %v2290_v16, %v2287_v22 }
 0x392   :  { %v2133_v26 = vpop.f32.mrb[132].mxu1 }
 0x393   :  { %v3780_v50 = vpop.f32.mrb[100].mxu0  ;;  %3838 = vmatprep.mubr.bf16.mxu0 %v2477_v25  ;;  %v2135_v21 = vpop.f32.mrb[133].mxu1 }
 0x394   :  { %v2302_v28 = vpop.f32.mrb[101].mxu0  ;;  %3839 = vmatmul.mubr.bf16.vlgmr.msra.gmra.mrb[136].mxu0 %v2478_v9  ;;  %v2311_v52 = vadd.f32 %v3780_v50, %v2085_v40  ;;  %v2136_v30 = vpop.f32.mrb[134].mxu1 }
 0x395   :  { %v2303_v31 = vadd.f32 %v2302_v28, %v2077_v46  ;;  %v3781_v29 = vpop.f32.mrb[102].mxu0  ;;  %v2138_v35 = vpop.f32.mrb[135].mxu1 }
 0x396   :  { %v2305_v19 = vpop.f32.mrb[103].mxu0  ;;  %v2314_v36 = vadd.f32 %v3781_v29, %v2088_v11 }
 0x397   :  { %v2306_v33 = vadd.f32 %v2305_v19, %v2080_v62 }
 0x398   :  { %v2480_v24 = vpack.c.bf16 %v2314_v36, %v2311_v52 }
 0x399   :  { %v2479_v39 = vpack.c.bf16 %v2306_v33, %v2303_v31 }
 0x39a   :  { %v2141_v41 = vpop.f32.mrb[136].mxu1 }
 0x39b   :  { %v3784_v59 = vpop.f32.mrb[104].mxu0  ;;  %3842 = vmatprep.mubr.bf16.mxu0 %v2479_v39  ;;  %v2143_v42 = vpop.f32.mrb[137].mxu1 }
 0x39c   :  { %v2318_v27 = vpop.f32.mrb[105].mxu0  ;;  %3843 = vmatmul.mubr.bf16.gmra.mrb[140].mxu0 %v2480_v24  ;;  %v2327_v63 = vadd.f32 %v3784_v59, %v2101_v61  ;;  %v2144_v0 = vpop.f32.mrb[138].mxu1 }
 0x39d   :  { %v2319_v34 = vadd.f32 %v2318_v27, %v2093_v55  ;;  %v3785_v45 = vpop.f32.mrb[106].mxu0  ;;  %v2146_v7 = vpop.f32.mrb[139].mxu1 }
 0x39e   :  { %v2321_v37 = vpop.f32.mrb[107].mxu0  ;;  %v2330_v32 = vadd.f32 %v3785_v45, %v2104_v43 }
 0x39f   :  { %v2322_v57 = vadd.f32 %v2321_v37, %v2096_v60 }
 0x3a0   :  { %v2482_v46 = vpack.c.bf16 %v2330_v32, %v2327_v63 }
 0x3a1   :  { %v2481_v47 = vpack.c.bf16 %v2322_v57, %v2319_v34 }
 0x3a2   :  { %v2149_v48 = vpop.f32.mrb[140].mxu1 }
 0x3a3   :  { %v3788_v62 = vpop.f32.mrb[108].mxu0  ;;  %3846 = vmatprep.mubr.bf16.mxu0 %v2481_v47  ;;  %v2151_v40 = vpop.f32.mrb[141].mxu1 }
 0x3a4   :  { %v2334_v51 = vpop.f32.mrb[109].mxu0  ;;  %3847 = vmatmul.mubr.bf16.gmra.mrb[144].mxu0 %v2482_v46  ;;  %v2343_v11 = vadd.f32 %v3788_v62, %v2117_v10  ;;  %v2152_v44 = vpop.f32.mrb[142].mxu1 }
 0x3a5   :  { %v2335_v56 = vadd.f32 %v2334_v51, %v2109_v5  ;;  %v3789_v38 = vpop.f32.mrb[110].mxu0  ;;  %v2154_v61 = vpop.f32.mrb[143].mxu1 }
 0x3a6   :  { %v2337_v1 = vpop.f32.mrb[111].mxu0  ;;  %v2346_v55 = vadd.f32 %v3789_v38, %v2120_v58 }
 0x3a7   :  { %v2338_v2 = vadd.f32 %v2337_v1, %v4939_v6 }
 0x3a8   :  { %v2484_v3 = vpack.c.bf16 %v2346_v55, %v2343_v11 }
 0x3a9   :  { %v2483_v43 = vpack.c.bf16 %v2338_v2, %v2335_v56 }
 0x3aa   :  { %v2157_v60 = vpop.f32.mrb[144].mxu1 }
 0x3ab   :  { %v3792_v54 = vpop.f32.mrb[112].mxu0  ;;  %3850 = vmatprep.mubr.bf16.mxu0 %v2483_v43  ;;  %v2159_v8 = vpop.f32.mrb[145].mxu1 }
 0x3ac   :  { %v2350_v12 = vpop.f32.mrb[113].mxu0  ;;  %3851 = vmatmul.mubr.bf16.gmra.mrb[148].mxu0 %v2484_v3  ;;  %v2359_v49 = vadd.f32 %v3792_v54, %v2133_v26  ;;  %v2160_v18 = vpop.f32.mrb[146].mxu1 }
 0x3ad   :  { %v2351_v10 = vadd.f32 %v2350_v12, %v4941_v13  ;;  %v3793_v14 = vpop.f32.mrb[114].mxu0  ;;  %v2162_v5 = vpop.f32.mrb[147].mxu1 }
 0x3ae   :  { %v2353_v53 = vpop.f32.mrb[115].mxu0  ;;  %v2362_v22 = vadd.f32 %v3793_v14, %v2136_v30 }
 0x3af   :  { %v2354_v58 = vadd.f32 %v2353_v53, %v4943_v15 }
 0x3b0   :  { %v2486_v17 = vpack.c.bf16 %v2362_v22, %v2359_v49 }
 0x3b1   :  { %v2485_v6 = vpack.c.bf16 %v2354_v58, %v2351_v10 }
 0x3b2   :  { %v2165_v20 = vpop.f32.mrb[148].mxu1 }
 0x3b3   :  { %v3796_v4 = vpop.f32.mrb[116].mxu0  ;;  %3854 = vmatprep.mubr.bf16.mxu0 %v2485_v6  ;;  %v2167_v23 = vpop.f32.mrb[149].mxu1 }
 0x3b4   :  { %v2366_v16 = vpop.f32.mrb[117].mxu0  ;;  %3855 = vmatmul.mubr.bf16.gmra.mrb[152].mxu0 %v2486_v17  ;;  %v2375_v9 = vadd.f32 %v3796_v4, %v2149_v48  ;;  %v2168_v25 = vpop.f32.mrb[150].mxu1 }
 0x3b5   :  { %v2367_v26 = vadd.f32 %v2366_v16, %v2141_v41  ;;  %v3797_v50 = vpop.f32.mrb[118].mxu0  ;;  %v2170_v21 = vpop.f32.mrb[151].mxu1 }
 0x3b6   :  { %v2369_v13 = vpop.f32.mrb[119].mxu0  ;;  %v2378_v28 = vadd.f32 %v3797_v50, %v2152_v44 }
 0x3b7   :  { %v2370_v52 = vadd.f32 %v2369_v13, %v2144_v0 }
 0x3b8   :  { %v2488_v31 = vpack.c.bf16 %v2378_v28, %v2375_v9 }
 0x3b9   :  { %v2487_v30 = vpack.c.bf16 %v2370_v52, %v2367_v26 }
 0x3ba   :  { %v2173_v29 = vpop.f32.mrb[152].mxu1 }
 0x3bb   :  { %v3800_v15 = vpop.f32.mrb[120].mxu0  ;;  %3858 = vmatprep.mubr.bf16.mxu0 %v2487_v30  ;;  %v2175_v35 = vpop.f32.mrb[153].mxu1 }
 0x3bc   :  { %v2382_v19 = vpop.f32.mrb[121].mxu0  ;;  %3859 = vmatmul.mubr.bf16.gmra.mrb[156].mxu0 %v2488_v31  ;;  %v2391_v36 = vadd.f32 %v3800_v15, %v2165_v20  ;;  %v2176_v33 = vpop.f32.mrb[154].mxu1 }
 0x3bd   :  { %v2383_v24 = vadd.f32 %v2382_v19, %v2157_v60  ;;  %v3801_v39 = vpop.f32.mrb[122].mxu0  ;;  %v2178_v59 = vpop.f32.mrb[155].mxu1 }
 0x3be   :  { %v2385_v42 = vpop.f32.mrb[123].mxu0  ;;  %v2394_v41 = vadd.f32 %v3801_v39, %v2168_v25 }
 0x3bf   :  { %v2386_v27 = vadd.f32 %v2385_v42, %v2160_v18 }
 0x3c0   :  { %v2490_v63 = vpack.c.bf16 %v2394_v41, %v2391_v36 }
 0x3c1   :  { %v2489_v34 = vpack.c.bf16 %v2386_v27, %v2383_v24 }
 0x3c2   :  { %v2181_v45 = vpop.f32.mrb[156].mxu1 }
 0x3c3   :  { %v3804_v0 = vpop.f32.mrb[124].mxu0  ;;  %3862 = vmatprep.mubr.bf16.mxu0 %v2489_v34  ;;  %v2183_v7 = vpop.f32.mrb[157].mxu1 }
 0x3c4   :  { %v2398_v37 = vpop.f32.mrb[125].mxu0  ;;  %3863 = vmatmul.mubr.bf16.gmra.mrb[160].mxu0 %v2490_v63  ;;  %v2407_v32 = vadd.f32 %v3804_v0, %v2181_v45  ;;  %v2184_v57 = vpop.f32.mrb[158].mxu1 }
 0x3c5   :  { %v2399_v46 = vadd.f32 %v2398_v37, %v2173_v29  ;;  %v3805_v47 = vpop.f32.mrb[126].mxu0  ;;  %v2186_v48 = vpop.f32.mrb[159].mxu1 }
 0x3c6   :  { %v2401_v62 = vpop.f32.mrb[127].mxu0  ;;  %v2410_v40 = vadd.f32 %v3805_v47, %v2184_v57 }
 0x3c7   :  { %v2402_v51 = vadd.f32 %v2401_v62, %v2176_v33 }
 0x3c8   :  { %v2492_v11 = vpack.c.bf16 %v2410_v40, %v2407_v32 }
 0x3c9   :  { %v2491_v44 = vpack.c.bf16 %v2402_v51, %v2399_v46 }
 0x3ca   :  { %v2189_v56 = vpop.f32.mrb[160].mxu1 }
 0x3cb   :  { %v2191_v38 = vpop.f32.mrb[161].mxu1  ;;  %v3808_v61 = vpop.f32.mrb[128].mxu0  ;;  %3866 = vmatprep.mubr.bf16.mxu0 %v2491_v44 }
 0x3cc   :  { %v2192_v1 = vpop.f32.mrb[162].mxu1  ;;  %v2414_v55 = vpop.f32.mrb[129].mxu0  ;;  %3867 = vmatmul.mubr.bf16.gmra.mrb[164].mxu0 %v2492_v11 }
 0x3cd   :  { %v2194_v2 = vpop.f32.mrb[163].mxu1  ;;  %v2415_v3 = vadd.f32 %v2414_v55, %v2189_v56  ;;  %v3809_v43 = vpop.f32.mrb[130].mxu0 }
 0x3ce   :  { %v2417_v60 = vpop.f32.mrb[131].mxu0 }
 0x3cf   :  { %v2418_v54 = vadd.f32 %v2417_v60, %v2192_v1  ;;  %v4951_v60 = vld [vmem:[%s5577_s6] ss:$0 sm:$0xff] }
 0x3d1   :  { %v2493_v8 = vpack.c.bf16 %v2418_v54, %v2415_v3 }
 0x3d2   :  { %v2197_v12 = vpop.f32.mrb[164].mxu1 }
 0x3d3   :  { %v2423_v49 = vadd.f32 %v3808_v61, %v2197_v12  ;;  %v2199_v18 = vpop.f32.mrb[165].mxu1  ;;  %v3812_v10 = vpop.f32.mrb[132].mxu0  ;;  %3870 = vmatprep.mubr.bf16.mxu0 %v2493_v8 }
 0x3d4   :  { %v2200_v14 = vpop.f32.mrb[166].mxu1  ;;  %v2430_v5 = vpop.f32.mrb[133].mxu0 }
 0x3d5   :  { %v2426_v53 = vadd.f32 %v3809_v43, %v2200_v14  ;;  %v2202_v22 = vpop.f32.mrb[167].mxu1  ;;  %v3813_v58 = vpop.f32.mrb[134].mxu0 }
 0x3d6   :  { %v2433_v17 = vpop.f32.mrb[135].mxu0 }
 0x3d7   :  { %v2494_v6 = vpack.c.bf16 %v2426_v53, %v2423_v49 }
 0x3d9   :  { %3871 = vmatmul.mubr.bf16.gmra.mrb[168].mxu0 %v2494_v6 }
 0x3da   :  { %v2205_v20 = vpop.f32.mrb[168].mxu1 }
 0x3db   :  { %v2207_v4 = vpop.f32.mrb[169].mxu1  ;;  %v2431_v23 = vadd.f32 %v2430_v5, %v2205_v20 }
 0x3dc   :  { %v2208_v16 = vpop.f32.mrb[170].mxu1 }
 0x3dd   :  { %v2210_v9 = vpop.f32.mrb[171].mxu1  ;;  %v2434_v25 = vadd.f32 %v2433_v17, %v2208_v16 }
 0x3df   :  { %v2495_v26 = vpack.c.bf16 %v2434_v25, %v2431_v23 }
 0x3e1   :  { %3874 = vmatprep.mubr.bf16.mxu0 %v2495_v26 }
 0x3e2   :  { %v2213_v50 = vpop.f32.mrb[172].mxu1 }
 0x3e3   :  { %v2439_v21 = vadd.f32 %v3812_v10, %v2213_v50  ;;  %v2215_v13 = vpop.f32.mrb[173].mxu1 }
 0x3e4   :  { %v2216_v28 = vpop.f32.mrb[174].mxu1 }
 0x3e5   :  { %v2442_v52 = vadd.f32 %v3813_v58, %v2216_v28  ;;  %v2218_v31 = vpop.f32.mrb[175].mxu1 }
 0x3e7   :  { %v2496_v30 = vpack.c.bf16 %v2442_v52, %v2439_v21 }
 0x3e9   :  { %3875 = vmatmul.mubr.bf16.gmra.mrb[172].mxu0 %v2496_v30 }
 0x3ea   :  { %v2221_v29 = vpop.f32.mrb[176].mxu1 }
 0x3eb   :  { %v2223_v15 = vpop.f32.mrb[177].mxu1 }
 0x3ec   :  { %v2224_v35 = vpop.f32.mrb[178].mxu1 }
 0x3ed   :  { %v2226_v19 = vpop.f32.mrb[179].mxu1 }
 0x3f2   :  { %v2229_v36 = vpop.f32.mrb[180].mxu1 }
 0x3f3   :  { %v2231_v33 = vpop.f32.mrb[181].mxu1 }
 0x3f4   :  { %v2232_v24 = vpop.f32.mrb[182].mxu1 }
 0x3f5   :  { %v2234_v39 = vpop.f32.mrb[183].mxu1 }
 0x3fa   :  { %v2237_v59 = vpop.f32.mrb[184].mxu1 }
 0x3fb   :  { %v2239_v42 = vpop.f32.mrb[185].mxu1 }
 0x3fc   :  { %v2240_v41 = vpop.f32.mrb[186].mxu1 }
 0x3fd   :  { %v2242_v27 = vpop.f32.mrb[187].mxu1 }
 0x402   :  { %v2245_v63 = vpop.f32.mrb[188].mxu1 }
 0x403   :  { %v2247_v34 = vpop.f32.mrb[189].mxu1 }
 0x404   :  { %v2248_v45 = vpop.f32.mrb[190].mxu1 }
 0x405   :  { %v2250_v0 = vpop.f32.mrb[191].mxu1 }
 0x40a   :  { %v3816_v7 = vpop.f32.mrb[192].mxu1 }
 0x40b   :  { %v2455_v37 = vadd.f32 %v3816_v7, %v2229_v36  ;;  %v2446_v32 = vpop.f32.mrb[193].mxu1 }
 0x40c   :  { %v2447_v57 = vadd.f32 %v2446_v32, %v2221_v29  ;;  %v3817_v46 = vpop.f32.mrb[194].mxu1 }
 0x40d   :  { %v2458_v47 = vadd.f32 %v3817_v46, %v2232_v24  ;;  %v2449_v48 = vpop.f32.mrb[195].mxu1 }
 0x40e   :  { %v2450_v62 = vadd.f32 %v2449_v48, %v2224_v35 }
 0x40f   :  { %v2498_v40 = vpack.c.bf16 %v2458_v47, %v2455_v37 }
 0x410   :  { %v2497_v51 = vpack.c.bf16 %v2450_v62, %v2447_v57 }
 0x412   :  { %v3820_v11 = vpop.f32.mrb[196].mxu1  ;;  %3878 = vmatprep.mubr.bf16.mxu0 %v2497_v51 }
 0x413   :  { %v2471_v44 = vadd.f32 %v3820_v11, %v2245_v63  ;;  %v2462_v56 = vpop.f32.mrb[197].mxu1  ;;  %3879 = vmatmul.mubr.bf16.gmra.mrb[176].mxu0 %v2498_v40 }
 0x414   :  { %v2463_v38 = vadd.f32 %v2462_v56, %v2237_v59  ;;  %v3821_v61 = vpop.f32.mrb[198].mxu1 }
 0x415   :  { %v2474_v1 = vadd.f32 %v3821_v61, %v2248_v45  ;;  %v2465_v55 = vpop.f32.mrb[199].mxu1 }
 0x416   :  { %v2466_v2 = vadd.f32 %v2465_v55, %v2240_v41 }
 0x417   :  { %v2500_v3 = vpack.c.bf16 %v2474_v1, %v2471_v44 }
 0x418   :  { %v2499_v43 = vpack.c.bf16 %v2466_v2, %v2463_v38 }
 0x41a   :  { %3882 = vmatprep.mubr.bf16.mxu0 %v2499_v43 }
 0x41b   :  { %3883 = vmatmul.mubr.bf16.gmra.mrb[180].mxu0 %v2500_v3 }
 0x467   :  { %v3840_v54 = vpop.f32.mrb[136].mxu0 }
 0x468   :  { %v2606_v8 = vpop.f32.mrb[137].mxu0  ;;  %v2615_v12 = vadd.f32 %v3840_v54, %v4951_v60 }
 0x469   :  { %v2607_v49 = vadd.f32 %v4951_v60, %v2606_v8  ;;  %v3841_v18 = vpop.f32.mrb[138].mxu0 }
 0x46a   :  { %v2618_v10 = vadd.f32 %v3841_v18, %v4951_v60  ;;  %v2609_v14 = vpop.f32.mrb[139].mxu0  ;;  %v4959_v22 = vmax.f32 %v2615_v12, 0.0 }
 0x46b   :  { %v4956_v5 = vmax.f32 %v2607_v49, 0.0  ;;  %v2610_v53 = vadd.f32 %v4951_v60, %v2609_v14 }
 0x46c   :  { %v4963_v17 = vmax.f32 %v2618_v10, 0.0  ;;  %v3046_v25 = vmul.f32 %v4959_v22, %v4959_v22 }
 0x46d   :  { %v4961_v58 = vmax.f32 %v2610_v53, 0.0  ;;  %v3044_v6 = vmul.f32 %v4956_v5, %v4956_v5 }
 0x46e   :  { %v3047_v28 = vmul.f32 %v4963_v17, %v4963_v17 }
 0x46f   :  { %v2990_v20 = vadd.f32 %v4961_v58, %v4956_v5  ;;  %v3045_v4 = vmul.f32 %v4961_v58, %v4961_v58  ;;  %v3844_v23 = vpop.f32.mrb[140].mxu0 }
 0x470   :  { %v2631_v16 = vadd.f32 %v3844_v23, %v4951_v60  ;;  %v2622_v9 = vpop.f32.mrb[141].mxu0 }
 0x471   :  { %v2991_v26 = vadd.f32 %v2990_v20, %v4959_v22  ;;  %v3092_v50 = vadd.f32 %v3045_v4, %v3044_v6  ;;  %v2623_v21 = vadd.f32 %v4951_v60, %v2622_v9  ;;  %v3845_v13 = vpop.f32.mrb[142].mxu0 }
 0x472   :  { %v2634_v52 = vadd.f32 %v3845_v13, %v4951_v60  ;;  %v2625_v31 = vpop.f32.mrb[143].mxu0  ;;  %v4983_v19 = vmax.f32 %v2631_v16, 0.0 }
 0x473   :  { %v3093_v30 = vadd.f32 %v3092_v50, %v3046_v25  ;;  %v4979_v29 = vmax.f32 %v2623_v21, 0.0  ;;  %v2992_v15 = vadd.f32 %v2991_v26, %v4963_v17  ;;  %v2626_v35 = vadd.f32 %v4951_v60, %v2625_v31 }
 0x474   :  { %v4990_v59 = vmax.f32 %v2634_v52, 0.0  ;;  %v3050_v0 = vmul.f32 %v4983_v19, %v4983_v19 }
 0x475   :  { %v2993_v36 = vadd.f32 %v2992_v15, %v4979_v29  ;;  %v3048_v33 = vmul.f32 %v4979_v29, %v4979_v29  ;;  %v3094_v24 = vadd.f32 %v3093_v30, %v3047_v28  ;;  %v4988_v39 = vmax.f32 %v2626_v35, 0.0 }
 0x476   :  { %v3051_v46 = vmul.f32 %v4990_v59, %v4990_v59 }
 0x477   :  { %v3095_v42 = vadd.f32 %v3094_v24, %v3048_v33  ;;  %v2994_v41 = vadd.f32 %v2993_v36, %v4988_v39  ;;  %v3049_v27 = vmul.f32 %v4988_v39, %v4988_v39  ;;  %v3848_v63 = vpop.f32.mrb[144].mxu0 }
 0x478   :  { %v2647_v34 = vadd.f32 %v3848_v63, %v4951_v60  ;;  %v2638_v45 = vpop.f32.mrb[145].mxu0 }
 0x479   :  { %v2995_v7 = vadd.f32 %v2994_v41, %v4983_v19  ;;  %v3096_v37 = vadd.f32 %v3095_v42, %v3049_v27  ;;  %v2639_v32 = vadd.f32 %v4951_v60, %v2638_v45  ;;  %v3849_v57 = vpop.f32.mrb[146].mxu0 }
 0x47a   :  { %v2650_v47 = vadd.f32 %v3849_v57, %v4951_v60  ;;  %v2641_v48 = vpop.f32.mrb[147].mxu0  ;;  %v5007_v44 = vmax.f32 %v2647_v34, 0.0 }
 0x47b   :  { %v3097_v62 = vadd.f32 %v3096_v37, %v3050_v0  ;;  %v5003_v40 = vmax.f32 %v2639_v32, 0.0  ;;  %v2996_v51 = vadd.f32 %v2995_v7, %v4990_v59  ;;  %v2642_v11 = vadd.f32 %v4951_v60, %v2641_v48 }
 0x47c   :  { %v5014_v55 = vmax.f32 %v2650_v47, 0.0  ;;  %v3054_v49 = vmul.f32 %v5007_v44, %v5007_v44 }
 0x47d   :  { %v2997_v56 = vadd.f32 %v2996_v51, %v5003_v40  ;;  %v3052_v38 = vmul.f32 %v5003_v40, %v5003_v40  ;;  %v3098_v61 = vadd.f32 %v3097_v62, %v3051_v46  ;;  %v5012_v1 = vmax.f32 %v2642_v11, 0.0 }
 0x47e   :  { %v3055_v6 = vmul.f32 %v5014_v55, %v5014_v55 }
 0x47f   :  { %v3099_v2 = vadd.f32 %v3098_v61, %v3052_v38  ;;  %v2998_v3 = vadd.f32 %v2997_v56, %v5012_v1  ;;  %v3053_v43 = vmul.f32 %v5012_v1, %v5012_v1  ;;  %v3852_v54 = vpop.f32.mrb[148].mxu0 }
 0x480   :  { %v2663_v8 = vadd.f32 %v3852_v54, %v4951_v60  ;;  %v2654_v12 = vpop.f32.mrb[149].mxu0 }
 0x481   :  { %v2999_v18 = vadd.f32 %v2998_v3, %v5007_v44  ;;  %v3100_v10 = vadd.f32 %v3099_v2, %v3053_v43  ;;  %v2655_v14 = vadd.f32 %v4951_v60, %v2654_v12  ;;  %v3853_v53 = vpop.f32.mrb[150].mxu0 }
 0x482   :  { %v2666_v20 = vadd.f32 %v3853_v53, %v4951_v60  ;;  %v2657_v4 = vpop.f32.mrb[151].mxu0  ;;  %v5031_v26 = vmax.f32 %v2663_v8, 0.0 }
 0x483   :  { %v3101_v23 = vadd.f32 %v3100_v10, %v3054_v49  ;;  %v5027_v16 = vmax.f32 %v2655_v14, 0.0  ;;  %v3000_v9 = vadd.f32 %v2999_v18, %v5014_v55  ;;  %v2658_v25 = vadd.f32 %v4951_v60, %v2657_v4 }
 0x484   :  { %v5038_v52 = vmax.f32 %v2666_v20, 0.0  ;;  %v3058_v24 = vmul.f32 %v5031_v26, %v5031_v26 }
 0x485   :  { %v3001_v50 = vadd.f32 %v3000_v9, %v5027_v16  ;;  %v3056_v21 = vmul.f32 %v5027_v16, %v5027_v16  ;;  %v3102_v13 = vadd.f32 %v3101_v23, %v3055_v6  ;;  %v5036_v28 = vmax.f32 %v2658_v25, 0.0 }
 0x486   :  { %v3059_v34 = vmul.f32 %v5038_v52, %v5038_v52 }
 0x487   :  { %v3103_v31 = vadd.f32 %v3102_v13, %v3056_v21  ;;  %v3002_v30 = vadd.f32 %v3001_v50, %v5036_v28  ;;  %v3057_v15 = vmul.f32 %v5036_v28, %v5036_v28  ;;  %v3856_v35 = vpop.f32.mrb[152].mxu0 }
 0x488   :  { %v2679_v36 = vadd.f32 %v3856_v35, %v4951_v60  ;;  %v2670_v33 = vpop.f32.mrb[153].mxu0 }
 0x489   :  { %v3003_v42 = vadd.f32 %v3002_v30, %v5031_v26  ;;  %v3104_v41 = vadd.f32 %v3103_v31, %v3057_v15  ;;  %v2671_v27 = vadd.f32 %v4951_v60, %v2670_v33  ;;  %v3857_v63 = vpop.f32.mrb[154].mxu0 }
 0x48a   :  { %v2682_v45 = vadd.f32 %v3857_v63, %v4951_v60  ;;  %v2673_v0 = vpop.f32.mrb[155].mxu0  ;;  %v5055_v46 = vmax.f32 %v2679_v36, 0.0 }
 0x48b   :  { %v3105_v7 = vadd.f32 %v3104_v41, %v3058_v24  ;;  %v5051_v37 = vmax.f32 %v2671_v27, 0.0  ;;  %v3004_v32 = vadd.f32 %v3003_v42, %v5038_v52  ;;  %v2674_v57 = vadd.f32 %v4951_v60, %v2673_v0 }
 0x48c   :  { %v5062_v11 = vmax.f32 %v2682_v45, 0.0  ;;  %v3062_v54 = vmul.f32 %v5055_v46, %v5055_v46 }
 0x48d   :  { %v3005_v47 = vadd.f32 %v3004_v32, %v5051_v37  ;;  %v3060_v48 = vmul.f32 %v5051_v37, %v5051_v37  ;;  %v3106_v62 = vadd.f32 %v3105_v7, %v3059_v34  ;;  %v5060_v51 = vmax.f32 %v2674_v57, 0.0 }
 0x48e   :  { %v3063_v10 = vmul.f32 %v5062_v11, %v5062_v11 }
 0x48f   :  { %v3107_v56 = vadd.f32 %v3106_v62, %v3060_v48  ;;  %v3006_v38 = vadd.f32 %v3005_v47, %v5060_v51  ;;  %v3061_v61 = vmul.f32 %v5060_v51, %v5060_v51  ;;  %v3860_v2 = vpop.f32.mrb[156].mxu0 }
 0x490   :  { %v2695_v3 = vadd.f32 %v3860_v2, %v4951_v60  ;;  %v2686_v43 = vpop.f32.mrb[157].mxu0 }
 0x491   :  { %v3007_v8 = vadd.f32 %v3006_v38, %v5055_v46  ;;  %v3108_v12 = vadd.f32 %v3107_v56, %v3061_v61  ;;  %v2687_v49 = vadd.f32 %v4951_v60, %v2686_v43  ;;  %v3861_v18 = vpop.f32.mrb[158].mxu0 }
 0x492   :  { %v2698_v14 = vadd.f32 %v3861_v18, %v4951_v60  ;;  %v2689_v53 = vpop.f32.mrb[159].mxu0  ;;  %v5079_v9 = vmax.f32 %v2695_v3, 0.0 }
 0x493   :  { %v3109_v6 = vadd.f32 %v3108_v12, %v3062_v54  ;;  %v5075_v20 = vmax.f32 %v2687_v49, 0.0  ;;  %v3008_v4 = vadd.f32 %v3007_v8, %v5062_v11  ;;  %v2690_v23 = vadd.f32 %v4951_v60, %v2689_v53 }
 0x494   :  { %v5086_v31 = vmax.f32 %v2698_v14, 0.0  ;;  %v3066_v42 = vmul.f32 %v5079_v9, %v5079_v9 }
 0x495   :  { %v3009_v25 = vadd.f32 %v3008_v4, %v5075_v20  ;;  %v3064_v50 = vmul.f32 %v5075_v20, %v5075_v20  ;;  %v3110_v21 = vadd.f32 %v3109_v6, %v3063_v10  ;;  %v5084_v13 = vmax.f32 %v2690_v23, 0.0 }
 0x496   :  { %v3067_v45 = vmul.f32 %v5086_v31, %v5086_v31 }
 0x497   :  { %v3111_v30 = vadd.f32 %v3110_v21, %v3064_v50  ;;  %v3010_v15 = vadd.f32 %v3009_v25, %v5084_v13  ;;  %v3065_v35 = vmul.f32 %v5084_v13, %v5084_v13  ;;  %v3864_v36 = vpop.f32.mrb[160].mxu0 }
 0x498   :  { %v2711_v33 = vadd.f32 %v3864_v36, %v4951_v60  ;;  %v2702_v24 = vpop.f32.mrb[161].mxu0 }
 0x499   :  { %v3011_v41 = vadd.f32 %v3010_v15, %v5079_v9  ;;  %v3112_v27 = vadd.f32 %v3111_v30, %v3065_v35  ;;  %v2703_v63 = vadd.f32 %v4951_v60, %v2702_v24  ;;  %v3865_v34 = vpop.f32.mrb[162].mxu0 }
 0x49a   :  { %v2714_v0 = vadd.f32 %v3865_v34, %v4951_v60  ;;  %v2705_v7 = vpop.f32.mrb[163].mxu0  ;;  %v5103_v62 = vmax.f32 %v2711_v33, 0.0 }
 0x49b   :  { %v3113_v32 = vadd.f32 %v3112_v27, %v3066_v42  ;;  %v5099_v57 = vmax.f32 %v2703_v63, 0.0  ;;  %v3012_v47 = vadd.f32 %v3011_v41, %v5086_v31  ;;  %v2706_v48 = vadd.f32 %v4951_v60, %v2705_v7 }
 0x49c   :  { %v5110_v3 = vmax.f32 %v2714_v0, 0.0  ;;  %v3070_v10 = vmul.f32 %v5103_v62, %v5103_v62 }
 0x49d   :  { %v3013_v56 = vadd.f32 %v3012_v47, %v5099_v57  ;;  %v3068_v38 = vmul.f32 %v5099_v57, %v5099_v57  ;;  %v3114_v61 = vadd.f32 %v3113_v32, %v3067_v45  ;;  %v5108_v2 = vmax.f32 %v2706_v48, 0.0 }
 0x49e   :  { %v3071_v23 = vmul.f32 %v5110_v3, %v5110_v3 }
 0x49f   :  { %v3115_v43 = vadd.f32 %v3114_v61, %v3068_v38  ;;  %v3014_v54 = vadd.f32 %v3013_v56, %v5108_v2  ;;  %v3069_v8 = vmul.f32 %v5108_v2, %v5108_v2  ;;  %v3868_v12 = vpop.f32.mrb[164].mxu0 }
 0x4a0   :  { %v2727_v49 = vadd.f32 %v3868_v12, %v4951_v60  ;;  %v2718_v18 = vpop.f32.mrb[165].mxu0 }
 0x4a1   :  { %v3015_v14 = vadd.f32 %v3014_v54, %v5103_v62  ;;  %v3116_v53 = vadd.f32 %v3115_v43, %v3069_v8  ;;  %v2719_v6 = vadd.f32 %v4951_v60, %v2718_v18  ;;  %v3869_v4 = vpop.f32.mrb[166].mxu0 }
 0x4a2   :  { %v2730_v25 = vadd.f32 %v3869_v4, %v4951_v60  ;;  %v2721_v50 = vpop.f32.mrb[167].mxu0  ;;  %v5127_v36 = vmax.f32 %v2727_v49, 0.0 }
 0x4a3   :  { %v3117_v21 = vadd.f32 %v3116_v53, %v3070_v10  ;;  %v5123_v30 = vmax.f32 %v2719_v6, 0.0  ;;  %v3016_v15 = vadd.f32 %v3015_v14, %v5110_v3  ;;  %v2722_v35 = vadd.f32 %v4951_v60, %v2721_v50 }
 0x4a4   :  { %v5134_v63 = vmax.f32 %v2730_v25, 0.0  ;;  %v3074_v0 = vmul.f32 %v5127_v36, %v5127_v36 }
 0x4a5   :  { %v3017_v33 = vadd.f32 %v3016_v15, %v5123_v30  ;;  %v3072_v24 = vmul.f32 %v5123_v30, %v5123_v30  ;;  %v3118_v42 = vadd.f32 %v3117_v21, %v3071_v23  ;;  %v5132_v41 = vmax.f32 %v2722_v35, 0.0 }
 0x4a6   :  { %v3075_v47 = vmul.f32 %v5134_v63, %v5134_v63  ;;  %v2845_v35 = vlaneseq }
 0x4a7   :  { %v3119_v27 = vadd.f32 %v3118_v42, %v3072_v24  ;;  %v3018_v34 = vadd.f32 %v3017_v33, %v5132_v41  ;;  %v3073_v45 = vmul.f32 %v5132_v41, %v5132_v41 }
 0x4a9   :  { %v3019_v7 = vadd.f32 %v3018_v34, %v5127_v36  ;;  %v3120_v32 = vadd.f32 %v3119_v27, %v3073_v45 }
 0x4ab   :  { %v3121_v48 = vadd.f32 %v3120_v32, %v3074_v0  ;;  %v3020_v56 = vadd.f32 %v3019_v7, %v5134_v63  ;;  %v5169_v0 = vshrl.u32 %v2845_v35, 7 }
 0x4ac   :  { %v3872_v38 = vpop.f32.mrb[168].mxu0 }
 0x4ad   :  { %v2734_v61 = vpop.f32.mrb[169].mxu0  ;;  %v3122_v43 = vadd.f32 %v3121_v48, %v3075_v47  ;;  %v2743_v54 = vadd.f32 %v3872_v38, %v4951_v60  ;;  %v2883_v48 = vadd.s32 296, %v5169_v0 }
 0x4ae   :  { %v2735_v8 = vadd.f32 %v4951_v60, %v2734_v61  ;;  %v3873_v12 = vpop.f32.mrb[170].mxu0 }
 0x4af   :  { %v2737_v49 = vpop.f32.mrb[171].mxu0  ;;  %v2746_v10 = vadd.f32 %v3873_v12, %v4951_v60  ;;  %v5151_v53 = vmax.f32 %v2743_v54, 0.0  ;;  %vm2931_vm0 = vcmp.lt.s32.totalorder %v2883_v48, 300 }
 0x4b0   :  { %v5147_v18 = vmax.f32 %v2735_v8, 0.0  ;;  %v2738_v14 = vadd.f32 %v4951_v60, %v2737_v49 }
 0x4b1   :  { %v5158_v50 = vmax.f32 %v2746_v10, 0.0  ;;  %v3078_v33 = vmul.f32 %v5151_v53, %v5151_v53 }
 0x4b2   :  { %v3021_v6 = vadd.f32 %v3020_v56, %v5147_v18  ;;  %v3076_v4 = vmul.f32 %v5147_v18, %v5147_v18  ;;  %v5156_v23 = vmax.f32 %v2738_v14, 0.0 }
 0x4b3   :  { %v3079_v27 = vmul.f32 %v5158_v50, %v5158_v50 }
 0x4b4   :  { %v3123_v25 = vadd.f32 %v3122_v43, %v3076_v4  ;;  %v3022_v21 = vadd.f32 %v3021_v6, %v5156_v23  ;;  %v3077_v15 = vmul.f32 %v5156_v23, %v5156_v23 }
 0x4b6   :  { %v3023_v24 = vadd.f32 %v3022_v21, %v5151_v53  ;;  %v3124_v42 = vadd.f32 %v3123_v25, %v3077_v15 }
 0x4b8   :  { %v3125_v34 = vadd.f32 %v3124_v42, %v3078_v33  ;;  %v3024_v45 = vadd.f32 %v3023_v24, %v5158_v50 }
 0x4ba   :  { %v3126_v7 = vadd.f32 %v3125_v34, %v3079_v27 }
 0x4bc   :  { %v3876_v32 = vpop.f32.mrb[172].mxu0 }
 0x4bd   :  { %v2750_v47 = vpop.f32.mrb[173].mxu0 }
 0x4be   :  { %v2751_v56 = vadd.f32 %v4951_v60, %v2750_v47  ;;  %v3877_v38 = vpop.f32.mrb[174].mxu0 }
 0x4bf   :  { %v2753_v61 = vpop.f32.mrb[175].mxu0 }
 0x4c0   :  { %v5173_v43 = vmax.f32 %v2751_v56, 0.0  ;;  %v5176_v54 = vadd.f32 %v4951_v60, %v2753_v61 }
 0x4c2   :  { %5583 = vst [vmem:[#allocation2_spill] sm:$0xff] %v5176_v54  ;;  %v3025_v8 = vadd.f32 %v3024_v45, %v5173_v43  ;;  %v3080_v12 = vmul.f32 %v5173_v43, %v5173_v43  ;;  %v5582_v49 = vmax.f32 %v5176_v54, 0.0 }
 0x4c4   :  { %v3127_v10 = vadd.f32 %v3126_v7, %v3080_v12  ;;  %v2979_v14 = vsel %vm2931_vm0, %v5582_v49, 0.0 }
 0x4c5   :  { %v3026_v6 = vadd.f32 %v3025_v8, %v2979_v14  ;;  %v3081_v4 = vmul.f32 %v2979_v14, %v2979_v14  ;;  %v5188_v14 = vadd.f32 %v3876_v32, %v4951_v60  ;;  %v3153_v32 = vld [vmem:[%s5579_s8] sm:$0x1] }
 0x4c7   :  { %v3037_v25 = vrot.slane %v3026_v6, 4  ;;  %v3128_v21 = vadd.f32 %v3127_v10, %v3081_v4  ;;  %v3149_v10 = vld [vmem:[%s5578_s7] sm:$0x1]  ;;  %v3159_v4 = vsub.s32 0, %v5169_v0 }
 0x4c9   :  { %v3038_v15 = vadd.f32 %v3037_v25, %v3026_v6  ;;  %v3139_v35 = vrot.slane %v3128_v21, 4  ;;  %v5191_v6 = vadd.f32 %v3877_v38, %v4951_v60 }
 0x4cb   :  { %v3039_v33 = vrot.slane %v3038_v15, 2  ;;  %v3140_v24 = vadd.f32 %v3139_v35, %v3128_v21 }
 0x4cd   :  { %v3040_v42 = vadd.f32 %v3039_v33, %v3038_v15  ;;  %v3141_v27 = vrot.slane %v3140_v24, 2 }
 0x4cf   :  { %v3041_v34 = vrot.slane %v3040_v42, 1  ;;  %v3142_v45 = vadd.f32 %v3141_v27, %v3140_v24  ;;  %v2836_v27 = vmax.f32 %v5191_v6, 0.0 }
 0x4d1   :  { %v3042_v47 = vadd.f32 %v3041_v34, %v3040_v42  ;;  %v3143_v48 = vrot.slane %v3142_v45, 1  ;;  %v2835_v42 = vmax.f32 %v5188_v14, 0.0 }
 0x4d3   :  { %v3043_v56 = vmul.f32 0.0033333334, %v3042_v47  ;;  %v3144_v61 = vadd.f32 %v3143_v48, %v3142_v45 }
 0x4d5   :  { %v3145_v7 = vmul.f32 0.0033333334, %v3144_v61  ;;  %v3146_v12 = vmul.f32 %v3043_v56, %v3043_v56 }
 0x4d7   :  { %v3147_v54 = vsub.f32 %v3145_v7, %v3146_v12 }
 0x4d9   :  { %v3148_v49 = vmax.f32 %v3147_v54, 0.0 }
 0x4db   :  { %v3150_v8 = vadd.f32 1e-05, %v3148_v49 }
 0x4dd   :  { %4135 = vrsqrt.f32 %v3150_v8 }
 0x4e6   :  { %v3880_v25 = vpop.f32.mrb[176].mxu0 }
 0x4e7   :  { %v4136_v21 = vpop.eup %4135  ;;  %v5195_v15 = vadd.f32 %v3880_v25, %v4951_v60  ;;  %v2766_v54 = vpop.f32.mrb[177].mxu0 }
 0x4e8   :  { %v3152_v49 = vmul.f32 %v4136_v21, %v3149_v10  ;;  %v2767_v35 = vadd.f32 %v4951_v60, %v2766_v54  ;;  %v3881_v33 = vpop.f32.mrb[178].mxu0 }
 0x4e9   :  { %v2778_v24 = vadd.f32 %v3881_v33, %v4951_v60  ;;  %v2769_v38 = vpop.f32.mrb[179].mxu0  ;;  %v2839_v47 = vmax.f32 %v5195_v15, 0.0 }
 0x4ea   :  { %v3154_v34 = vmul.f32 %v3152_v49, %v3043_v56  ;;  %v5206_v45 = vrot.slane %v3152_v49, %v3159_v4  ;;  %v2837_v48 = vmax.f32 %v2767_v35, 0.0  ;;  %v5210_v7 = vadd.f32 %v4951_v60, %v2769_v38 }
 0x4eb   :  { %v2840_v61 = vmax.f32 %v2778_v24, 0.0 }
 0x4ec   :  { %v3155_v12 = vsub.f32 %v3153_v32, %v3154_v34  ;;  %v3162_v8 = vmul.f32 %v5206_v45, %v4956_v5  ;;  %v3163_v10 = vmul.f32 %v5206_v45, %v4961_v58  ;;  %v3164_v56 = vmul.f32 %v5206_v45, %v4959_v22 }
 0x4ed   :  { %v3165_v14 = vmul.f32 %v5206_v45, %v4963_v17  ;;  %v3166_v6 = vmul.f32 %v5206_v45, %v4979_v29  ;;  %v3167_v25 = vmul.f32 %v5206_v45, %v4988_v39  ;;  %v3168_v21 = vmul.f32 %v5206_v45, %v4983_v19 }
 0x4ee   :  { %v3169_v5 = vmul.f32 %v5206_v45, %v4990_v59  ;;  %v3170_v58 = vmul.f32 %v5206_v45, %v5003_v40  ;;  %v3171_v22 = vmul.f32 %v5206_v45, %v5012_v1  ;;  %v3172_v17 = vmul.f32 %v5206_v45, %v5007_v44  ;;  %v3884_v15 = vpop.f32.mrb[180].mxu0 }
 0x4ef   :  { %v3173_v29 = vmul.f32 %v5206_v45, %v5014_v55  ;;  %v3174_v39 = vmul.f32 %v5206_v45, %v5027_v16  ;;  %v3175_v19 = vmul.f32 %v5206_v45, %v5036_v28  ;;  %v3176_v59 = vmul.f32 %v5206_v45, %v5031_v26  ;;  %v2782_v40 = vpop.f32.mrb[181].mxu0 }
 0x4f0   :  { %v3177_v1 = vmul.f32 %v5206_v45, %v5038_v52  ;;  %v3178_v44 = vmul.f32 %v5206_v45, %v5051_v37  ;;  %v3179_v54 = vmul.f32 %v5206_v45, %v5060_v51  ;;  %v3180_v55 = vmul.f32 %v5206_v45, %v5055_v46  ;;  %v5250_v16 = vpop.f32.mrb[182].mxu0 }
 0x4f1   :  { %v3181_v28 = vmul.f32 %v5206_v45, %v5062_v11  ;;  %v3182_v26 = vmul.f32 %v5206_v45, %v5075_v20  ;;  %v3183_v52 = vmul.f32 %v5206_v45, %v5084_v13  ;;  %v3184_v37 = vmul.f32 %v5206_v45, %v5079_v9  ;;  %v5260_v49 = vpop.f32.mrb[183].mxu0 }
 0x4f2   :  { %v3185_v51 = vmul.f32 %v5206_v45, %v5086_v31  ;;  %v5266_v46 = vmul.f32 %v5206_v45, %v5099_v57  ;;  %v5270_v11 = vmul.f32 %v5206_v45, %v5108_v2  ;;  %v5274_v20 = vmul.f32 %v5206_v45, %v5103_v62 }
 0x4f3   :  { %v5278_v9 = vmul.f32 %v5206_v45, %v5110_v3  ;;  %v5282_v13 = vmul.f32 %v5206_v45, %v5123_v30  ;;  %v5286_v31 = vmul.f32 %v5206_v45, %v5132_v41  ;;  %v5290_v57 = vmul.f32 %v5206_v45, %v5127_v36 }
 0x4f4   :  { %v5294_v62 = vmul.f32 %v5206_v45, %v5134_v63  ;;  %v5298_v2 = vmul.f32 %v5206_v45, %v5147_v18  ;;  %v5302_v3 = vmul.f32 %v5206_v45, %v5156_v23  ;;  %v5306_v30 = vmul.f32 %v5206_v45, %v5151_v53  ;;  %v5584_v63 = vld [vmem:[#allocation2_spill] sm:$0xff] }
 0x4f5   :  { %v5310_v36 = vmul.f32 %v5206_v45, %v5158_v50  ;;  %v5314_v41 = vmul.f32 %v5206_v45, %v5173_v43  ;;  %v5585_v35 = vmax.f32 %v5584_v63, 0.0  ;;  %v5322_v23 = vmul.f32 %v5206_v45, %v2835_v42 }
 0x4f6   :  { %v5325_v33 = vmul.f32 %v5206_v45, %v2836_v27  ;;  %v5329_v53 = vrot.slane %v3155_v12, %v3159_v4  ;;  %v5332_v50 = vmul.f32 %v5206_v45, %v2839_v47  ;;  %v5335_v43 = vmul.f32 %v5206_v45, %v2837_v48 }
 0x4f7   :  { %v5319_v18 = vmul.f32 %v5206_v45, %v5585_v35  ;;  %v5338_v32 = vmul.f32 %v5206_v45, %v2840_v61  ;;  %v2838_v24 = vmax.f32 %v5210_v7, 0.0  ;;  %v5342_v38 = vadd.f32 %v3884_v15, %v4951_v60 }
 0x4f8   :  { %v5345_v42 = vadd.f32 %v4951_v60, %v2782_v40  ;;  %v3216_v0 = vadd.f32 %v5329_v53, %v3162_v8  ;;  %v3217_v4 = vadd.f32 %v5329_v53, %v3163_v10  ;;  %v3218_v27 = vadd.f32 %v5329_v53, %v3164_v56 }
 0x4f9   :  { %v3219_v34 = vadd.f32 %v5329_v53, %v3165_v14  ;;  %v3220_v47 = vadd.f32 %v5329_v53, %v3166_v6  ;;  %v3221_v48 = vadd.f32 %v5329_v53, %v3167_v25  ;;  %v3222_v61 = vadd.f32 %v5329_v53, %v3168_v21 }
 0x4fa   :  { %v3223_v12 = vadd.f32 %v5329_v53, %v3169_v5  ;;  %v3224_v15 = vadd.f32 %v5329_v53, %v3170_v58  ;;  %v3225_v40 = vadd.f32 %v5329_v53, %v3171_v22  ;;  %v3226_v8 = vadd.f32 %v5329_v53, %v3172_v17  ;;  %3264 = vst [vmem:[%s5580_s9] sm:$0xff] %v3216_v0 }
 0x4fb   :  { %v3227_v10 = vadd.f32 %v5329_v53, %v3173_v29  ;;  %3265 = vst [vmem:[%s5580_s9 + $0x8] sm:$0xff] %v3217_v4  ;;  %3266 = vst [vmem:[%s5580_s9 + $0x10] sm:$0xff] %v3218_v27  ;;  %v3228_v56 = vadd.f32 %v5329_v53, %v3174_v39  ;;  %v3229_v14 = vadd.f32 %v5329_v53, %v3175_v19  ;;  %v2843_v7 = vmax.f32 %v5342_v38, 0.0 }
 0x4fc   :  { %3267 = vst [vmem:[%s5580_s9 + $0x18] sm:$0xff] %v3219_v34  ;;  %v3230_v6 = vadd.f32 %v5329_v53, %v3176_v59  ;;  %v3231_v25 = vadd.f32 %v5329_v53, %v3177_v1  ;;  %3268 = vst [vmem:[%s5580_s9 + $0x20] sm:$0xff] %v3220_v47  ;;  %v3232_v21 = vadd.f32 %v5329_v53, %v3178_v44 }
 0x4fd   :  { %3269 = vst [vmem:[%s5580_s9 + $0x28] sm:$0xff] %v3221_v48  ;;  %3270 = vst [vmem:[%s5580_s9 + $0x30] sm:$0xff] %v3222_v61  ;;  %v3233_v5 = vadd.f32 %v5329_v53, %v3179_v54  ;;  %v3234_v58 = vadd.f32 %v5329_v53, %v3180_v55  ;;  %v3235_v22 = vadd.f32 %v5329_v53, %v3181_v28 }
 0x4fe   :  { %3271 = vst [vmem:[%s5580_s9 + $0x38] sm:$0xff] %v3223_v12  ;;  %3272 = vst [vmem:[%s5580_s9 + $0x40] sm:$0xff] %v3224_v15  ;;  %v3236_v17 = vadd.f32 %v5329_v53, %v3182_v26  ;;  %v3237_v29 = vadd.f32 %v5329_v53, %v3183_v52  ;;  %v3238_v39 = vadd.f32 %v5329_v53, %v3184_v37 }
 0x4ff   :  { %3273 = vst [vmem:[%s5580_s9 + $0x48] sm:$0xff] %v3225_v40  ;;  %3274 = vst [vmem:[%s5580_s9 + $0x50] sm:$0xff] %v3226_v8  ;;  %v3239_v19 = vadd.f32 %v5329_v53, %v3185_v51  ;;  %v3240_v59 = vadd.f32 %v5329_v53, %v5266_v46  ;;  %v3241_v1 = vadd.f32 %v5329_v53, %v5270_v11 }
 0x500   :  { %3275 = vst [vmem:[%s5580_s9 + $0x58] sm:$0xff] %v3227_v10  ;;  %3276 = vst [vmem:[%s5580_s9 + $0x60] sm:$0xff] %v3228_v56  ;;  %v3242_v44 = vadd.f32 %v5329_v53, %v5274_v20  ;;  %v3243_v54 = vadd.f32 %v5329_v53, %v5278_v9  ;;  %v3244_v55 = vadd.f32 %v5329_v53, %v5282_v13 }
 0x501   :  { %3277 = vst [vmem:[%s5580_s9 + $0x68] sm:$0xff] %v3229_v14  ;;  %3278 = vst [vmem:[%s5580_s9 + $0x70] sm:$0xff] %v3230_v6  ;;  %v3245_v28 = vadd.f32 %v5329_v53, %v5286_v31  ;;  %v3246_v26 = vadd.f32 %v5329_v53, %v5290_v57  ;;  %v3247_v52 = vadd.f32 %v5329_v53, %v5294_v62 }
 0x502   :  { %3279 = vst [vmem:[%s5580_s9 + $0x78] sm:$0xff] %v3231_v25  ;;  %3280 = vst [vmem:[%s5580_s9 + $0x80] sm:$0xff] %v3232_v21  ;;  %v3248_v37 = vadd.f32 %v5329_v53, %v5298_v2  ;;  %v3249_v51 = vadd.f32 %v5329_v53, %v5302_v3  ;;  %v3250_v46 = vadd.f32 %v5329_v53, %v5306_v30  ;;  %v2841_v30 = vmax.f32 %v5345_v42, 0.0 }
 0x503   :  { %3281 = vst [vmem:[%s5580_s9 + $0x88] sm:$0xff] %v3233_v5  ;;  %3282 = vst [vmem:[%s5580_s9 + $0x90] sm:$0xff] %v3234_v58  ;;  %v3251_v11 = vadd.f32 %v5329_v53, %v5310_v36  ;;  %v3252_v20 = vadd.f32 %v5329_v53, %v5314_v41  ;;  %v3253_v9 = vadd.f32 %v5329_v53, %v5319_v18 }
 0x504   :  { %3283 = vst [vmem:[%s5580_s9 + $0x98] sm:$0xff] %v3235_v22  ;;  %3284 = vst [vmem:[%s5580_s9 + $0xa0] sm:$0xff] %v3236_v17  ;;  %v3254_v13 = vadd.f32 %v5329_v53, %v5322_v23  ;;  %v3255_v31 = vadd.f32 %v5329_v53, %v5325_v33  ;;  %v3258_v57 = vadd.f32 %v5329_v53, %v5332_v50 }
 0x505   :  { %3285 = vst [vmem:[%s5580_s9 + $0xa8] sm:$0xff] %v3237_v29  ;;  %3286 = vst [vmem:[%s5580_s9 + $0xb0] sm:$0xff] %v3238_v39  ;;  %v3256_v62 = vadd.f32 %v5329_v53, %v5335_v43  ;;  %v3259_v2 = vadd.f32 %v5329_v53, %v5338_v32  ;;  %v3203_v3 = vmul.f32 %v5206_v45, %v2838_v24 }
 0x506   :  { %3287 = vst [vmem:[%s5580_s9 + $0xb8] sm:$0xff] %v3239_v19  ;;  %3288 = vst [vmem:[%s5580_s9 + $0xc0] sm:$0xff] %v3240_v59  ;;  %v2794_v36 = vadd.f32 %v5250_v16, %v4951_v60  ;;  %v2786_v41 = vadd.f32 %v4951_v60, %v5260_v49  ;;  %v3208_v35 = vmul.f32 %v5206_v45, %v2843_v7 }
 0x507   :  { %3289 = vst [vmem:[%s5580_s9 + $0xc8] sm:$0xff] %v3241_v1  ;;  %3290 = vst [vmem:[%s5580_s9 + $0xd0] sm:$0xff] %v3242_v44  ;;  %v3257_v63 = vadd.f32 %v5329_v53, %v3203_v3  ;;  %v3206_v16 = vmul.f32 %v5206_v45, %v2841_v30 }
 0x508   :  { %3291 = vst [vmem:[%s5580_s9 + $0xd8] sm:$0xff] %v3243_v54  ;;  %3292 = vst [vmem:[%s5580_s9 + $0xe0] sm:$0xff] %v3244_v55  ;;  %v2844_v18 = vmax.f32 %v2794_v36, 0.0  ;;  %v2842_v60 = vmax.f32 %v2786_v41, 0.0  ;;  %v3262_v49 = vadd.f32 %v5329_v53, %v3208_v35 }
 0x509   :  { %3293 = vst [vmem:[%s5580_s9 + $0xe8] sm:$0xff] %v3245_v28  ;;  %3294 = vst [vmem:[%s5580_s9 + $0xf0] sm:$0xff] %v3246_v26  ;;  %v3260_v23 = vadd.f32 %v5329_v53, %v3206_v16 }
 0x50a   :  { %3295 = vst [vmem:[%s5580_s9 + $0xf8] sm:$0xff] %v3247_v52  ;;  %3296 = vst [vmem:[%s5580_s9 + $0x100] sm:$0xff] %v3248_v37  ;;  %v3209_v33 = vmul.f32 %v5206_v45, %v2844_v18  ;;  %v3207_v50 = vmul.f32 %v5206_v45, %v2842_v60 }
 0x50b   :  { %3297 = vst [vmem:[%s5580_s9 + $0x108] sm:$0xff] %v3249_v51  ;;  %3298 = vst [vmem:[%s5580_s9 + $0x110] sm:$0xff] %v3250_v46 }
 0x50c   :  { %3299 = vst [vmem:[%s5580_s9 + $0x118] sm:$0xff] %v3251_v11  ;;  %3300 = vst [vmem:[%s5580_s9 + $0x120] sm:$0xff] %v3252_v20  ;;  %v3263_v43 = vadd.f32 %v5329_v53, %v3209_v33  ;;  %v3261_v32 = vadd.f32 %v5329_v53, %v3207_v50 }
 0x50d   :  { %3301 = vst [vmem:[%s5580_s9 + $0x128] sm:$0xff] %v3253_v9  ;;  %3302 = vst [vmem:[%s5580_s9 + $0x130] sm:$0xff] %v3254_v13 }
 0x50e   :  { %3303 = vst [vmem:[%s5580_s9 + $0x138] sm:$0xff] %v3255_v31  ;;  %3306 = vst [vmem:[%s5580_s9 + $0x150] sm:$0xff] %v3258_v57 }
 0x50f   :  { %3304 = vst [vmem:[%s5580_s9 + $0x140] sm:$0xff] %v3256_v62  ;;  %3307 = vst [vmem:[%s5580_s9 + $0x158] sm:$0xff] %v3259_v2 }
 0x510   :  { %3305 = vst [vmem:[%s5580_s9 + $0x148] sm:$0xff] %v3257_v63  ;;  %3310 = vst [vmem:[%s5580_s9 + $0x170] sm:$0xff] %v3262_v49 }
 0x511   :  { %3308 = vst [vmem:[%s5580_s9 + $0x160] sm:$0xff] %v3260_v23  ;;  %3311 = vst [vmem:[%s5580_s9 + $0x178] sm:$0xff] %v3263_v43 }
 0x512   :  { %3309 = vst [vmem:[%s5580_s9 + $0x168] sm:$0xff] %v3261_v32 }

</bundles_post_ra>
